<compile_context>
chip_gen: v7x
topology: tpu7x:2x2x1
jax: 0.10.0
libtpu: 0.0.40
codegen_flags: <defaults>
</compile_context>

<pallas_src>
import functools

import numpy as np
import jax
import jax.numpy as jnp
from jax.experimental import pallas as pl
from jax.experimental.pallas import tpu as pltpu


# ----------------------------------------------------------------------------
# Kernels
# ----------------------------------------------------------------------------
def _blaze_kernel_s1(x_ref, wf_ref, bf_ref, out_ref, *, group, Wo):
    """stride=1 BlazeBlock, one (batch, row-group) grid step.

    x_ref  : (Cin, Ho+2, W+2) bf16  zero-padded input (whole image, resident)
    wf_ref : (Cout, 9*Cin)    bf16  fused depthwise*pointwise weight
                                    (+ centre-tap identity for the residual)
    bf_ref : (Cout, 1)        f32   fused bias = pw_b + pw_w @ dw_b
    out_ref: (Cout, group*Wo) bf16  lane-dense slice of the NCHW-flat output
    """
    wf = wf_ref[...]                                   # resident, tiny
    bias = bf_ref[...]
    r0 = pl.multiple_of(pl.program_id(1) * group, group)
    # All rows needed by this group of output rows (dynamic, aligned start).
    slab = x_ref[:, pl.ds(r0, group + 2), :]           # (Cin, group+2, W+2)

    rows = []
    for l in range(group):
        # 9 taps, tap index t = kh*3 + kw, each (Cin, Wo): contiguous slices,
        # spatial stays on the lane axis throughout.
        taps = [slab[:, l + kh, kw:kw + Wo]
                for kh in range(3) for kw in range(3)]
        col = jnp.concatenate(taps, axis=0)            # (9*Cin, Wo) bf16
        # One NN-form MXU matmul per output row; f32 accumulation.
        y = jnp.dot(wf, col, preferred_element_type=jnp.float32)
        rows.append(jnp.clip(y + bias, 0.0, 6.0))      # bias + residual + ReLU6
    out = jnp.concatenate(rows, axis=1) if len(rows) > 1 else rows[0]
    out_ref[...] = out.astype(out_ref.dtype)           # single lane-dense store


def _blaze_kernel_s2(xe_ref, xo_ref, wf_ref, bf_ref, out_ref, *, group, Wo):
    """stride=2 BlazeBlock, one (batch, row-group) grid step.

    xe_ref : (Cin, H+1, Wo+1) bf16  even input columns (0,2,...,W) of the
                                    bottom/right zero-padded input
    xo_ref : (Cin, H+1, Wo)   bf16  odd input columns (1,3,...,W-1)
    wf_ref : (Cout, 10*Cin)   bf16  9 fused conv taps + maxpool-residual
                                    identity (eye(Cout, Cin)) columns
    bf_ref : (Cout, 1)        f32
    out_ref: (Cout, group*Wo) bf16
    """
    wf = wf_ref[...]
    bias = bf_ref[...]
    r0 = pl.multiple_of(pl.program_id(1) * (2 * group), 2 * group)
    es = xe_ref[:, pl.ds(r0, 2 * group + 1), :]        # (Cin, 2G+1, Wo+1)
    od = xo_ref[:, pl.ds(r0, 2 * group + 1), :]        # (Cin, 2G+1, Wo)

    rows = []
    for l in range(group):
        taps = []
        for kh in range(3):
            r = 2 * l + kh
            taps.append(es[:, r, 0:Wo])        # kw = 0 -> even column j
            taps.append(od[:, r, :])           # kw = 1 -> odd column j
            taps.append(es[:, r, 1:Wo + 1])    # kw = 2 -> even column j+1
        # Residual branch: 2x2 maxpool of the (unpadded) input, appended as a
        # 10th im2col block; its identity weight lives in wf, so the residual
        # add happens inside the same f32-accumulating matmul.
        res = jnp.maximum(
            jnp.maximum(es[:, 2 * l, 0:Wo], od[:, 2 * l, :]),
            jnp.maximum(es[:, 2 * l + 1, 0:Wo], od[:, 2 * l + 1, :]))
        col = jnp.concatenate(taps + [res], axis=0)    # (10*Cin, Wo) bf16
        y = jnp.dot(wf, col, preferred_element_type=jnp.float32)
        rows.append(jnp.clip(y + bias, 0.0, 6.0))
    out = jnp.concatenate(rows, axis=1) if len(rows) > 1 else rows[0]
    out_ref[...] = out.astype(out_ref.dtype)


# ----------------------------------------------------------------------------
# Wrapper
# ----------------------------------------------------------------------------
def _row_group(Ho, Wo):
    """Rows per grid step G (divides Ho): make G*Wo a multiple of 128 lanes
    (unmasked dense stores) and >= 512 lanes when possible (amortize the
    ~0.35us per-grid-step overhead); fall back to the whole image otherwise."""
    best = None
    for g in range(1, Ho + 1):
        if Ho % g:
            continue
        lanes = g * Wo
        if lanes % 128 == 0:
            if lanes >= 512:
                return g
            best = g
    return best if best is not None else Ho


def _vmem_limit_bytes():
    """Generation-aware VMEM budget (3/4 of physical, capped), safe fallback."""
    limit = 48 * 1024 * 1024
    try:
        cap = int(pltpu.get_tpu_info().vmem_capacity_bytes)
        if cap > 0:
            limit = min((cap * 3) // 4, 100 * 1024 * 1024)
    except Exception:
        pass
    return max(limit, 32 * 1024 * 1024)


def blaze_block(x_nchw, dw_w, dw_b, pw_w, pw_b, *, stride):
    """BlazeBlock forward.

    x_nchw : (N, Cin, H, W) float32/bfloat16
    dw_w   : (Cin, 3, 3)   depthwise weights (PyTorch (Cin,1,3,3) squeezed)
    dw_b   : (Cin,)
    pw_w   : (Cout, Cin)   pointwise weights (PyTorch (Cout,Cin,1,1) squeezed)
    pw_b   : (Cout,)
    returns (N, Cout, Ho, Wo) bfloat16
    """
    assert stride in (1, 2)
    N, Cin, H, W = x_nchw.shape
    Cout = pw_w.shape[0]
    assert Cout >= Cin, "BlazeBlock assumes out_channels >= in_channels"
    if stride == 2:
        assert H % 2 == 0 and W % 2 == 0, "stride=2 path assumes even H, W"
        Ho, Wo = H // 2, W // 2
    else:
        Ho, Wo = H, W

    # ---- fold depthwise into pointwise (f32), residual identity, then bf16 --
    # wf[co, t*Cin + c] = pw[co, c] * dw[c, kh, kw],  t = kh*3 + kw
    dwf = dw_w.astype(jnp.float32).reshape(Cin, 9)
    pwf = pw_w.astype(jnp.float32)
    wf = (pwf[:, None, :] * dwf.T[None, :, :]).reshape(Cout, 9 * Cin)
    bf = (pw_b.astype(jnp.float32) + pwf @ dw_b.astype(jnp.float32)
          ).reshape(Cout, 1)                          # bias stays f32
    eye = jnp.eye(Cout, Cin, dtype=jnp.float32)       # channel zero-pad built in
    if stride == 1:
        wf = wf.at[:, 4 * Cin:5 * Cin].add(eye)       # residual == centre tap
    else:
        wf = jnp.concatenate([wf, eye], axis=1)       # residual == 2x2 maxpool
    K = wf.shape[1]
    wf = wf.astype(jnp.bfloat16)                      # bf16 MXU operand

    group = _row_group(Ho, Wo)
    n_groups = Ho // group

    # ---- activations: ONE fused HBM pass = bf16 cast (+ pad / even-odd split)
    xb = x_nchw.astype(jnp.bfloat16)
    if stride == 1:
        xpad = jnp.pad(xb, ((0, 0), (0, 0), (1, 1), (1, 1)))
        acts = (xpad,)
        in_specs = [pl.BlockSpec((None, Cin, H + 2, W + 2),
                                 lambda n, g: (n, 0, 0, 0))]
        kernel = functools.partial(_blaze_kernel_s1, group=group, Wo=Wo)
        act_bytes = xpad.size * 2
    else:
        # F.pad(x, [0,1,0,1]) semantics, then split even/odd columns so the
        # kernel only ever needs contiguous lane slices (no lane-stride-2).
        xp = jnp.pad(xb, ((0, 0), (0, 0), (0, 1), (0, 1)))
        xe = xp[:, :, :, 0::2]                        # (N, Cin, H+1, Wo+1)
        xo = xp[:, :, :, 1::2]                        # (N, Cin, H+1, Wo)
        acts = (xe, xo)
        in_specs = [pl.BlockSpec((None, Cin, H + 1, Wo + 1),
                                 lambda n, g: (n, 0, 0, 0)),
                    pl.BlockSpec((None, Cin, H + 1, Wo),
                                 lambda n, g: (n, 0, 0, 0))]
        kernel = functools.partial(_blaze_kernel_s2, group=group, Wo=Wo)
        act_bytes = (xe.size + xo.size) * 2

    # wf / bf: constant index_map -> resident across the whole grid.
    in_specs += [pl.BlockSpec((Cout, K), lambda n, g: (0, 0)),
                 pl.BlockSpec((Cout, 1), lambda n, g: (0, 0))]

    flops = 2 * N * Ho * Wo * K * Cout
    bytes_accessed = (act_bytes + wf.size * 2 + bf.size * 4
                      + N * Cout * Ho * Wo * 2)

    out_flat = pl.pallas_call(
        kernel,
        out_shape=jax.ShapeDtypeStruct((N, Cout, Ho * Wo), jnp.bfloat16),
        grid=(N, n_groups),
        in_specs=in_specs,
        out_specs=pl.BlockSpec((None, Cout, group * Wo),
                               lambda n, g: (n, 0, g)),
        compiler_params=pltpu.CompilerParams(
            dimension_semantics=("parallel", "parallel"),
            vmem_limit_bytes=_vmem_limit_bytes()),
        cost_estimate=pl.CostEstimate(flops=int(flops), transcendentals=0,
                                      bytes_accessed=int(bytes_accessed)),
    )(*acts, wf, bf)

    # (N, Cout, Ho*Wo) -> (N, Cout, Ho, Wo): layout-preserving, no data pass.
    return out_flat.reshape(N, Cout, Ho, Wo)


# ----------------------------------------------------------------------------
# Numpy reference (PyTorch module semantics, NCHW)
# ----------------------------------------------------------------------------
def reference_blaze_block(x, dw_w, dw_b, pw_w, pw_b, stride):
    x = np.asarray(x, np.float64)
    dw_w = np.asarray(dw_w, np.float64)
    dw_b = np.asarray(dw_b, np.float64)
    pw_w = np.asarray(pw_w, np.float64)
    pw_b = np.asarray(pw_b, np.float64)
    N, Cin, H, W = x.shape
    Cout = pw_w.shape[0]
    if stride == 2:
        cin = np.pad(x, ((0, 0), (0, 0), (0, 1), (0, 1)))
        Ho, Wo = H // 2, W // 2
        res = x.reshape(N, Cin, Ho, 2, Wo, 2).max(axis=(3, 5))
    else:
        cin = np.pad(x, ((0, 0), (0, 0), (1, 1), (1, 1)))
        Ho, Wo = H, W
        res = x
    dw = np.zeros((N, Cin, Ho, Wo))
    for i in range(Ho):
        for j in range(Wo):
            patch = cin[:, :, i * stride:i * stride + 3, j * stride:j * stride + 3]
            dw[:, :, i, j] = (patch * dw_w[None]).sum(axis=(2, 3)) + dw_b[None]
    pw = np.einsum('nchw,oc->nohw', dw, pw_w) + pw_b[None, :, None, None]
    cpad = Cout - Cin
    if cpad > 0:
        res = np.pad(res, ((0, 0), (0, cpad), (0, 0), (0, 0)))
    return np.clip(pw + res, 0.0, 6.0)


# ----------------------------------------------------------------------------
# Self-test
# ----------------------------------------------------------------------------
if __name__ == "__main__":
    key = jax.random.PRNGKey(0)
    cases = [
        # (N, Cin, H, W, Cout)
        (2, 4, 16, 16, 8),     # channel pad (Cout > Cin), single row-group
        (2, 4, 16, 16, 4),     # no channel pad (Cout == Cin)
        (1, 4, 128, 32, 8),    # batch=1: multi row-group grid + megacore axis
    ]
    ok = True
    for (N, Cin, H, W, Cout) in cases:
        key, kx, k0, k1, k2, k3 = jax.random.split(key, 6)
        # Round inputs/weights to bf16 up front so the f64 reference sees the
        # same values as the bf16-storage kernel (remaining diff = folding /
        # bf16 weight rounding, covered by the tolerance below).
        def _bf(a):
            return a.astype(jnp.bfloat16).astype(jnp.float32)
        x = _bf(jax.random.normal(kx, (N, Cin, H, W), jnp.float32))
        dw_w = _bf(jax.random.normal(k0, (Cin, 3, 3), jnp.float32) * 0.3)
        dw_b = _bf(jax.random.normal(k1, (Cin,), jnp.float32) * 0.1)
        pw_w = _bf(jax.random.normal(k2, (Cout, Cin), jnp.float32) * 0.3)
        pw_b = _bf(jax.random.normal(k3, (Cout,), jnp.float32) * 0.1)
        for stride in (1, 2):
            out = jax.block_until_ready(
                blaze_block(x, dw_w, dw_b, pw_w, pw_b, stride=stride))
            out_np = np.asarray(out.astype(jnp.float32), dtype=np.float64)
            ref = reference_blaze_block(np.asarray(x), np.asarray(dw_w),
                                        np.asarray(dw_b), np.asarray(pw_w),
                                        np.asarray(pw_b), stride)
            if not np.allclose(out_np, ref, rtol=2e-2, atol=6e-2):
                ok = False
                print("mismatch:", (N, Cin, H, W, Cout), "stride", stride,
                      "max abs err:", float(np.max(np.abs(out_np - ref))))
    if ok:
        print("KERNEL_OK")
</pallas_src>

<mosaic_0001>
module attributes {stable_mosaic.version = 11 : i64} {
  func.func @_blaze_kernel_s1(%arg0: i32, %arg1: i32, %arg2: memref<1x4x18x18xbf16, #tpu.memory_space<vmem>>, %arg3: memref<8x36xbf16, #tpu.memory_space<vmem>>, %arg4: memref<8x1xf32, #tpu.memory_space<vmem>>, %arg5: memref<1x8x256xbf16, #tpu.memory_space<vmem>>) attributes {dimension_semantics = [#tpu.dimension_semantics<parallel>, #tpu.dimension_semantics<parallel>], iteration_bounds = array<i64: 2, 1>, scalar_prefetch = 0 : i64, scratch_operands = 0 : i64, tpu.core_type = #tpu.core_type<tc>, window_params = [{transform_indices = @transform_0, window_bounds = array<i64: 1, 4, 18, 18>}, {pipeline_mode = #tpu.pipeline_mode<synchronous>, transform_indices = @transform_1, window_bounds = array<i64: 8, 36>}, {pipeline_mode = #tpu.pipeline_mode<synchronous>, transform_indices = @transform_2, window_bounds = array<i64: 8, 1>}, {transform_indices = @transform_3, window_bounds = array<i64: 1, 8, 256>}]} {
    %c0 = arith.constant 0 : index
    %c0_0 = arith.constant 0 : index
    %0 = vector.load %arg3[%c0, %c0_0] : memref<8x36xbf16, #tpu.memory_space<vmem>>, vector<8x36xbf16>
    %c0_1 = arith.constant 0 : index
    %c0_2 = arith.constant 0 : index
    %1 = vector.load %arg4[%c0_1, %c0_2] : memref<8x1xf32, #tpu.memory_space<vmem>>, vector<8x1xf32>
    %c16_i32 = arith.constant 16 : i32
    %2 = arith.muli %arg1, %c16_i32 : i32
    %3 = tpu.assume_multiple %2, 16 : i32
    %c0_3 = arith.constant 0 : index
    %c0_4 = arith.constant 0 : index
    %4 = arith.index_cast %3 : i32 to index
    %c0_5 = arith.constant 0 : index
    %5 = vector.load %arg2[%c0_3, %c0_4, %4, %c0_5] : memref<1x4x18x18xbf16, #tpu.memory_space<vmem>>, vector<1x4x18x18xbf16>
    %6 = vector.shape_cast %5 : vector<1x4x18x18xbf16> to vector<4x18x18xbf16>
    %7 = vector.extract_strided_slice %6 {offsets = [0, 0, 0], sizes = [4, 1, 16], strides = [1, 1, 1]} : vector<4x18x18xbf16> to vector<4x1x16xbf16>
    %8 = vector.shape_cast %7 : vector<4x1x16xbf16> to vector<4x16xbf16>
    %9 = vector.extract_strided_slice %6 {offsets = [0, 0, 1], sizes = [4, 1, 16], strides = [1, 1, 1]} : vector<4x18x18xbf16> to vector<4x1x16xbf16>
    %10 = vector.shape_cast %9 : vector<4x1x16xbf16> to vector<4x16xbf16>
    %11 = vector.extract_strided_slice %6 {offsets = [0, 0, 2], sizes = [4, 1, 16], strides = [1, 1, 1]} : vector<4x18x18xbf16> to vector<4x1x16xbf16>
    %12 = vector.shape_cast %11 : vector<4x1x16xbf16> to vector<4x16xbf16>
    %13 = vector.extract_strided_slice %6 {offsets = [0, 1, 0], sizes = [4, 1, 16], strides = [1, 1, 1]} : vector<4x18x18xbf16> to vector<4x1x16xbf16>
    %14 = vector.shape_cast %13 : vector<4x1x16xbf16> to vector<4x16xbf16>
    %15 = vector.extract_strided_slice %6 {offsets = [0, 1, 1], sizes = [4, 1, 16], strides = [1, 1, 1]} : vector<4x18x18xbf16> to vector<4x1x16xbf16>
    %16 = vector.shape_cast %15 : vector<4x1x16xbf16> to vector<4x16xbf16>
    %17 = vector.extract_strided_slice %6 {offsets = [0, 1, 2], sizes = [4, 1, 16], strides = [1, 1, 1]} : vector<4x18x18xbf16> to vector<4x1x16xbf16>
    %18 = vector.shape_cast %17 : vector<4x1x16xbf16> to vector<4x16xbf16>
    %19 = vector.extract_strided_slice %6 {offsets = [0, 2, 0], sizes = [4, 1, 16], strides = [1, 1, 1]} : vector<4x18x18xbf16> to vector<4x1x16xbf16>
    %20 = vector.shape_cast %19 : vector<4x1x16xbf16> to vector<4x16xbf16>
    %21 = vector.extract_strided_slice %6 {offsets = [0, 2, 1], sizes = [4, 1, 16], strides = [1, 1, 1]} : vector<4x18x18xbf16> to vector<4x1x16xbf16>
    %22 = vector.shape_cast %21 : vector<4x1x16xbf16> to vector<4x16xbf16>
    %23 = vector.extract_strided_slice %6 {offsets = [0, 2, 2], sizes = [4, 1, 16], strides = [1, 1, 1]} : vector<4x18x18xbf16> to vector<4x1x16xbf16>
    %24 = vector.shape_cast %23 : vector<4x1x16xbf16> to vector<4x16xbf16>
    %25 = tpu.concatenate %8, %10, %12, %14, %16, %18, %20, %22, %24 in 0 : vector<4x16xbf16>, vector<4x16xbf16>, vector<4x16xbf16>, vector<4x16xbf16>, vector<4x16xbf16>, vector<4x16xbf16>, vector<4x16xbf16>, vector<4x16xbf16>, vector<4x16xbf16> -> vector<36x16xbf16>
    %cst = arith.constant dense<0.000000e+00> : vector<8x16xf32>
    %26 = tpu.matmul %0, %25, %cst {dimension_numbers = #tpu.dot_dimension_numbers<[1], [0], [0], [1], [0, 0, 1, 1], [], []>} : vector<8x36xbf16>, vector<36x16xbf16>, vector<8x16xf32> -> vector<8x16xf32>
    %27 = vector.broadcast %1 : vector<8x1xf32> to vector<8x16xf32>
    %28 = arith.addf %26, %27 : vector<8x16xf32>
    %cst_6 = arith.constant 0.000000e+00 : f32
    %cst_7 = arith.constant 6.000000e+00 : f32
    %29 = vector.broadcast %cst_6 : f32 to vector<8x16xf32>
    %30 = arith.maximumf %29, %28 : vector<8x16xf32>
    %31 = vector.broadcast %cst_7 : f32 to vector<8x16xf32>
    %32 = arith.minimumf %31, %30 : vector<8x16xf32>
    %33 = vector.extract_strided_slice %6 {offsets = [0, 1, 0], sizes = [4, 1, 16], strides = [1, 1, 1]} : vector<4x18x18xbf16> to vector<4x1x16xbf16>
    %34 = vector.shape_cast %33 : vector<4x1x16xbf16> to vector<4x16xbf16>
    %35 = vector.extract_strided_slice %6 {offsets = [0, 1, 1], sizes = [4, 1, 16], strides = [1, 1, 1]} : vector<4x18x18xbf16> to vector<4x1x16xbf16>
    %36 = vector.shape_cast %35 : vector<4x1x16xbf16> to vector<4x16xbf16>
    %37 = vector.extract_strided_slice %6 {offsets = [0, 1, 2], sizes = [4, 1, 16], strides = [1, 1, 1]} : vector<4x18x18xbf16> to vector<4x1x16xbf16>
    %38 = vector.shape_cast %37 : vector<4x1x16xbf16> to vector<4x16xbf16>
    %39 = vector.extract_strided_slice %6 {offsets = [0, 2, 0], sizes = [4, 1, 16], strides = [1, 1, 1]} : vector<4x18x18xbf16> to vector<4x1x16xbf16>
    %40 = vector.shape_cast %39 : vector<4x1x16xbf16> to vector<4x16xbf16>
    %41 = vector.extract_strided_slice %6 {offsets = [0, 2, 1], sizes = [4, 1, 16], strides = [1, 1, 1]} : vector<4x18x18xbf16> to vector<4x1x16xbf16>
    %42 = vector.shape_cast %41 : vector<4x1x16xbf16> to vector<4x16xbf16>
    %43 = vector.extract_strided_slice %6 {offsets = [0, 2, 2], sizes = [4, 1, 16], strides = [1, 1, 1]} : vector<4x18x18xbf16> to vector<4x1x16xbf16>
    %44 = vector.shape_cast %43 : vector<4x1x16xbf16> to vector<4x16xbf16>
    %45 = vector.extract_strided_slice %6 {offsets = [0, 3, 0], sizes = [4, 1, 16], strides = [1, 1, 1]} : vector<4x18x18xbf16> to vector<4x1x16xbf16>
    %46 = vector.shape_cast %45 : vector<4x1x16xbf16> to vector<4x16xbf16>
    %47 = vector.extract_strided_slice %6 {offsets = [0, 3, 1], sizes = [4, 1, 16], strides = [1, 1, 1]} : vector<4x18x18xbf16> to vector<4x1x16xbf16>
    %48 = vector.shape_cast %47 : vector<4x1x16xbf16> to vector<4x16xbf16>
    %49 = vector.extract_strided_slice %6 {offsets = [0, 3, 2], sizes = [4, 1, 16], strides = [1, 1, 1]} : vector<4x18x18xbf16> to vector<4x1x16xbf16>
    %50 = vector.shape_cast %49 : vector<4x1x16xbf16> to vector<4x16xbf16>
    %51 = tpu.concatenate %34, %36, %38, %40, %42, %44, %46, %48, %50 in 0 : vector<4x16xbf16>, vector<4x16xbf16>, vector<4x16xbf16>, vector<4x16xbf16>, vector<4x16xbf16>, vector<4x16xbf16>, vector<4x16xbf16>, vector<4x16xbf16>, vector<4x16xbf16> -> vector<36x16xbf16>
    %cst_8 = arith.constant dense<0.000000e+00> : vector<8x16xf32>
    %52 = tpu.matmul %0, %51, %cst_8 {dimension_numbers = #tpu.dot_dimension_numbers<[1], [0], [0], [1], [0, 0, 1, 1], [], []>} : vector<8x36xbf16>, vector<36x16xbf16>, vector<8x16xf32> -> vector<8x16xf32>
    %53 = vector.broadcast %1 : vector<8x1xf32> to vector<8x16xf32>
    %54 = arith.addf %52, %53 : vector<8x16xf32>
    %cst_9 = arith.constant 0.000000e+00 : f32
    %cst_10 = arith.constant 6.000000e+00 : f32
    %55 = vector.broadcast %cst_9 : f32 to vector<8x16xf32>
    %56 = arith.maximumf %55, %54 : vector<8x16xf32>
    %57 = vector.broadcast %cst_10 : f32 to vector<8x16xf32>
    %58 = arith.minimumf %57, %56 : vector<8x16xf32>
    %59 = vector.extract_strided_slice %6 {offsets = [0, 2, 0], sizes = [4, 1, 16], strides = [1, 1, 1]} : vector<4x18x18xbf16> to vector<4x1x16xbf16>
    %60 = vector.shape_cast %59 : vector<4x1x16xbf16> to vector<4x16xbf16>
    %61 = vector.extract_strided_slice %6 {offsets = [0, 2, 1], sizes = [4, 1, 16], strides = [1, 1, 1]} : vector<4x18x18xbf16> to vector<4x1x16xbf16>
    %62 = vector.shape_cast %61 : vector<4x1x16xbf16> to vector<4x16xbf16>
    %63 = vector.extract_strided_slice %6 {offsets = [0, 2, 2], sizes = [4, 1, 16], strides = [1, 1, 1]} : vector<4x18x18xbf16> to vector<4x1x16xbf16>
    %64 = vector.shape_cast %63 : vector<4x1x16xbf16> to vector<4x16xbf16>
    %65 = vector.extract_strided_slice %6 {offsets = [0, 3, 0], sizes = [4, 1, 16], strides = [1, 1, 1]} : vector<4x18x18xbf16> to vector<4x1x16xbf16>
    %66 = vector.shape_cast %65 : vector<4x1x16xbf16> to vector<4x16xbf16>
    %67 = vector.extract_strided_slice %6 {offsets = [0, 3, 1], sizes = [4, 1, 16], strides = [1, 1, 1]} : vector<4x18x18xbf16> to vector<4x1x16xbf16>
    %68 = vector.shape_cast %67 : vector<4x1x16xbf16> to vector<4x16xbf16>
    %69 = vector.extract_strided_slice %6 {offsets = [0, 3, 2], sizes = [4, 1, 16], strides = [1, 1, 1]} : vector<4x18x18xbf16> to vector<4x1x16xbf16>
    %70 = vector.shape_cast %69 : vector<4x1x16xbf16> to vector<4x16xbf16>
    %71 = vector.extract_strided_slice %6 {offsets = [0, 4, 0], sizes = [4, 1, 16], strides = [1, 1, 1]} : vector<4x18x18xbf16> to vector<4x1x16xbf16>
    %72 = vector.shape_cast %71 : vector<4x1x16xbf16> to vector<4x16xbf16>
    %73 = vector.extract_strided_slice %6 {offsets = [0, 4, 1], sizes = [4, 1, 16], strides = [1, 1, 1]} : vector<4x18x18xbf16> to vector<4x1x16xbf16>
    %74 = vector.shape_cast %73 : vector<4x1x16xbf16> to vector<4x16xbf16>
    %75 = vector.extract_strided_slice %6 {offsets = [0, 4, 2], sizes = [4, 1, 16], strides = [1, 1, 1]} : vector<4x18x18xbf16> to vector<4x1x16xbf16>
    %76 = vector.shape_cast %75 : vector<4x1x16xbf16> to vector<4x16xbf16>
    %77 = tpu.concatenate %60, %62, %64, %66, %68, %70, %72, %74, %76 in 0 : vector<4x16xbf16>, vector<4x16xbf16>, vector<4x16xbf16>, vector<4x16xbf16>, vector<4x16xbf16>, vector<4x16xbf16>, vector<4x16xbf16>, vector<4x16xbf16>, vector<4x16xbf16> -> vector<36x16xbf16>
    %cst_11 = arith.constant dense<0.000000e+00> : vector<8x16xf32>
    %78 = tpu.matmul %0, %77, %cst_11 {dimension_numbers = #tpu.dot_dimension_numbers<[1], [0], [0], [1], [0, 0, 1, 1], [], []>} : vector<8x36xbf16>, vector<36x16xbf16>, vector<8x16xf32> -> vector<8x16xf32>
    %79 = vector.broadcast %1 : vector<8x1xf32> to vector<8x16xf32>
    %80 = arith.addf %78, %79 : vector<8x16xf32>
    %cst_12 = arith.constant 0.000000e+00 : f32
    %cst_13 = arith.constant 6.000000e+00 : f32
    %81 = vector.broadcast %cst_12 : f32 to vector<8x16xf32>
    %82 = arith.maximumf %81, %80 : vector<8x16xf32>
    %83 = vector.broadcast %cst_13 : f32 to vector<8x16xf32>
    %84 = arith.minimumf %83, %82 : vector<8x16xf32>
    %85 = vector.extract_strided_slice %6 {offsets = [0, 3, 0], sizes = [4, 1, 16], strides = [1, 1, 1]} : vector<4x18x18xbf16> to vector<4x1x16xbf16>
    %86 = vector.shape_cast %85 : vector<4x1x16xbf16> to vector<4x16xbf16>
    %87 = vector.extract_strided_slice %6 {offsets = [0, 3, 1], sizes = [4, 1, 16], strides = [1, 1, 1]} : vector<4x18x18xbf16> to vector<4x1x16xbf16>
    %88 = vector.shape_cast %87 : vector<4x1x16xbf16> to vector<4x16xbf16>
    %89 = vector.extract_strided_slice %6 {offsets = [0, 3, 2], sizes = [4, 1, 16], strides = [1, 1, 1]} : vector<4x18x18xbf16> to vector<4x1x16xbf16>
    %90 = vector.shape_cast %89 : vector<4x1x16xbf16> to vector<4x16xbf16>
    %91 = vector.extract_strided_slice %6 {offsets = [0, 4, 0], sizes = [4, 1, 16], strides = [1, 1, 1]} : vector<4x18x18xbf16> to vector<4x1x16xbf16>
    %92 = vector.shape_cast %91 : vector<4x1x16xbf16> to vector<4x16xbf16>
    %93 = vector.extract_strided_slice %6 {offsets = [0, 4, 1], sizes = [4, 1, 16], strides = [1, 1, 1]} : vector<4x18x18xbf16> to vector<4x1x16xbf16>
    %94 = vector.shape_cast %93 : vector<4x1x16xbf16> to vector<4x16xbf16>
    %95 = vector.extract_strided_slice %6 {offsets = [0, 4, 2], sizes = [4, 1, 16], strides = [1, 1, 1]} : vector<4x18x18xbf16> to vector<4x1x16xbf16>
    %96 = vector.shape_cast %95 : vector<4x1x16xbf16> to vector<4x16xbf16>
    %97 = vector.extract_strided_slice %6 {offsets = [0, 5, 0], sizes = [4, 1, 16], strides = [1, 1, 1]} : vector<4x18x18xbf16> to vector<4x1x16xbf16>
    %98 = vector.shape_cast %97 : vector<4x1x16xbf16> to vector<4x16xbf16>
    %99 = vector.extract_strided_slice %6 {offsets = [0, 5, 1], sizes = [4, 1, 16], strides = [1, 1, 1]} : vector<4x18x18xbf16> to vector<4x1x16xbf16>
    %100 = vector.shape_cast %99 : vector<4x1x16xbf16> to vector<4x16xbf16>
    %101 = vector.extract_strided_slice %6 {offsets = [0, 5, 2], sizes = [4, 1, 16], strides = [1, 1, 1]} : vector<4x18x18xbf16> to vector<4x1x16xbf16>
    %102 = vector.shape_cast %101 : vector<4x1x16xbf16> to vector<4x16xbf16>
    %103 = tpu.concatenate %86, %88, %90, %92, %94, %96, %98, %100, %102 in 0 : vector<4x16xbf16>, vector<4x16xbf16>, vector<4x16xbf16>, vector<4x16xbf16>, vector<4x16xbf16>, vector<4x16xbf16>, vector<4x16xbf16>, vector<4x16xbf16>, vector<4x16xbf16> -> vector<36x16xbf16>
    %cst_14 = arith.constant dense<0.000000e+00> : vector<8x16xf32>
    %104 = tpu.matmul %0, %103, %cst_14 {dimension_numbers = #tpu.dot_dimension_numbers<[1], [0], [0], [1], [0, 0, 1, 1], [], []>} : vector<8x36xbf16>, vector<36x16xbf16>, vector<8x16xf32> -> vector<8x16xf32>
    %105 = vector.broadcast %1 : vector<8x1xf32> to vector<8x16xf32>
    %106 = arith.addf %104, %105 : vector<8x16xf32>
    %cst_15 = arith.constant 0.000000e+00 : f32
    %cst_16 = arith.constant 6.000000e+00 : f32
    %107 = vector.broadcast %cst_15 : f32 to vector<8x16xf32>
    %108 = arith.maximumf %107, %106 : vector<8x16xf32>
    %109 = vector.broadcast %cst_16 : f32 to vector<8x16xf32>
    %110 = arith.minimumf %109, %108 : vector<8x16xf32>
    %111 = vector.extract_strided_slice %6 {offsets = [0, 4, 0], sizes = [4, 1, 16], strides = [1, 1, 1]} : vector<4x18x18xbf16> to vector<4x1x16xbf16>
    %112 = vector.shape_cast %111 : vector<4x1x16xbf16> to vector<4x16xbf16>
    %113 = vector.extract_strided_slice %6 {offsets = [0, 4, 1], sizes = [4, 1, 16], strides = [1, 1, 1]} : vector<4x18x18xbf16> to vector<4x1x16xbf16>
    %114 = vector.shape_cast %113 : vector<4x1x16xbf16> to vector<4x16xbf16>
    %115 = vector.extract_strided_slice %6 {offsets = [0, 4, 2], sizes = [4, 1, 16], strides = [1, 1, 1]} : vector<4x18x18xbf16> to vector<4x1x16xbf16>
    %116 = vector.shape_cast %115 : vector<4x1x16xbf16> to vector<4x16xbf16>
    %117 = vector.extract_strided_slice %6 {offsets = [0, 5, 0], sizes = [4, 1, 16], strides = [1, 1, 1]} : vector<4x18x18xbf16> to vector<4x1x16xbf16>
    %118 = vector.shape_cast %117 : vector<4x1x16xbf16> to vector<4x16xbf16>
    %119 = vector.extract_strided_slice %6 {offsets = [0, 5, 1], sizes = [4, 1, 16], strides = [1, 1, 1]} : vector<4x18x18xbf16> to vector<4x1x16xbf16>
    %120 = vector.shape_cast %119 : vector<4x1x16xbf16> to vector<4x16xbf16>
    %121 = vector.extract_strided_slice %6 {offsets = [0, 5, 2], sizes = [4, 1, 16], strides = [1, 1, 1]} : vector<4x18x18xbf16> to vector<4x1x16xbf16>
    %122 = vector.shape_cast %121 : vector<4x1x16xbf16> to vector<4x16xbf16>
    %123 = vector.extract_strided_slice %6 {offsets = [0, 6, 0], sizes = [4, 1, 16], strides = [1, 1, 1]} : vector<4x18x18xbf16> to vector<4x1x16xbf16>
    %124 = vector.shape_cast %123 : vector<4x1x16xbf16> to vector<4x16xbf16>
    %125 = vector.extract_strided_slice %6 {offsets = [0, 6, 1], sizes = [4, 1, 16], strides = [1, 1, 1]} : vector<4x18x18xbf16> to vector<4x1x16xbf16>
    %126 = vector.shape_cast %125 : vector<4x1x16xbf16> to vector<4x16xbf16>
    %127 = vector.extract_strided_slice %6 {offsets = [0, 6, 2], sizes = [4, 1, 16], strides = [1, 1, 1]} : vector<4x18x18xbf16> to vector<4x1x16xbf16>
    %128 = vector.shape_cast %127 : vector<4x1x16xbf16> to vector<4x16xbf16>
    %129 = tpu.concatenate %112, %114, %116, %118, %120, %122, %124, %126, %128 in 0 : vector<4x16xbf16>, vector<4x16xbf16>, vector<4x16xbf16>, vector<4x16xbf16>, vector<4x16xbf16>, vector<4x16xbf16>, vector<4x16xbf16>, vector<4x16xbf16>, vector<4x16xbf16> -> vector<36x16xbf16>
    %cst_17 = arith.constant dense<0.000000e+00> : vector<8x16xf32>
    %130 = tpu.matmul %0, %129, %cst_17 {dimension_numbers = #tpu.dot_dimension_numbers<[1], [0], [0], [1], [0, 0, 1, 1], [], []>} : vector<8x36xbf16>, vector<36x16xbf16>, vector<8x16xf32> -> vector<8x16xf32>
    %131 = vector.broadcast %1 : vector<8x1xf32> to vector<8x16xf32>
    %132 = arith.addf %130, %131 : vector<8x16xf32>
    %cst_18 = arith.constant 0.000000e+00 : f32
    %cst_19 = arith.constant 6.000000e+00 : f32
    %133 = vector.broadcast %cst_18 : f32 to vector<8x16xf32>
    %134 = arith.maximumf %133, %132 : vector<8x16xf32>
    %135 = vector.broadcast %cst_19 : f32 to vector<8x16xf32>
    %136 = arith.minimumf %135, %134 : vector<8x16xf32>
    %137 = vector.extract_strided_slice %6 {offsets = [0, 5, 0], sizes = [4, 1, 16], strides = [1, 1, 1]} : vector<4x18x18xbf16> to vector<4x1x16xbf16>
    %138 = vector.shape_cast %137 : vector<4x1x16xbf16> to vector<4x16xbf16>
    %139 = vector.extract_strided_slice %6 {offsets = [0, 5, 1], sizes = [4, 1, 16], strides = [1, 1, 1]} : vector<4x18x18xbf16> to vector<4x1x16xbf16>
    %140 = vector.shape_cast %139 : vector<4x1x16xbf16> to vector<4x16xbf16>
    %141 = vector.extract_strided_slice %6 {offsets = [0, 5, 2], sizes = [4, 1, 16], strides = [1, 1, 1]} : vector<4x18x18xbf16> to vector<4x1x16xbf16>
    %142 = vector.shape_cast %141 : vector<4x1x16xbf16> to vector<4x16xbf16>
    %143 = vector.extract_strided_slice %6 {offsets = [0, 6, 0], sizes = [4, 1, 16], strides = [1, 1, 1]} : vector<4x18x18xbf16> to vector<4x1x16xbf16>
    %144 = vector.shape_cast %143 : vector<4x1x16xbf16> to vector<4x16xbf16>
    %145 = vector.extract_strided_slice %6 {offsets = [0, 6, 1], sizes = [4, 1, 16], strides = [1, 1, 1]} : vector<4x18x18xbf16> to vector<4x1x16xbf16>
    %146 = vector.shape_cast %145 : vector<4x1x16xbf16> to vector<4x16xbf16>
    %147 = vector.extract_strided_slice %6 {offsets = [0, 6, 2], sizes = [4, 1, 16], strides = [1, 1, 1]} : vector<4x18x18xbf16> to vector<4x1x16xbf16>
    %148 = vector.shape_cast %147 : vector<4x1x16xbf16> to vector<4x16xbf16>
    %149 = vector.extract_strided_slice %6 {offsets = [0, 7, 0], sizes = [4, 1, 16], strides = [1, 1, 1]} : vector<4x18x18xbf16> to vector<4x1x16xbf16>
    %150 = vector.shape_cast %149 : vector<4x1x16xbf16> to vector<4x16xbf16>
    %151 = vector.extract_strided_slice %6 {offsets = [0, 7, 1], sizes = [4, 1, 16], strides = [1, 1, 1]} : vector<4x18x18xbf16> to vector<4x1x16xbf16>
    %152 = vector.shape_cast %151 : vector<4x1x16xbf16> to vector<4x16xbf16>
    %153 = vector.extract_strided_slice %6 {offsets = [0, 7, 2], sizes = [4, 1, 16], strides = [1, 1, 1]} : vector<4x18x18xbf16> to vector<4x1x16xbf16>
    %154 = vector.shape_cast %153 : vector<4x1x16xbf16> to vector<4x16xbf16>
    %155 = tpu.concatenate %138, %140, %142, %144, %146, %148, %150, %152, %154 in 0 : vector<4x16xbf16>, vector<4x16xbf16>, vector<4x16xbf16>, vector<4x16xbf16>, vector<4x16xbf16>, vector<4x16xbf16>, vector<4x16xbf16>, vector<4x16xbf16>, vector<4x16xbf16> -> vector<36x16xbf16>
    %cst_20 = arith.constant dense<0.000000e+00> : vector<8x16xf32>
    %156 = tpu.matmul %0, %155, %cst_20 {dimension_numbers = #tpu.dot_dimension_numbers<[1], [0], [0], [1], [0, 0, 1, 1], [], []>} : vector<8x36xbf16>, vector<36x16xbf16>, vector<8x16xf32> -> vector<8x16xf32>
    %157 = vector.broadcast %1 : vector<8x1xf32> to vector<8x16xf32>
    %158 = arith.addf %156, %157 : vector<8x16xf32>
    %cst_21 = arith.constant 0.000000e+00 : f32
    %cst_22 = arith.constant 6.000000e+00 : f32
    %159 = vector.broadcast %cst_21 : f32 to vector<8x16xf32>
    %160 = arith.maximumf %159, %158 : vector<8x16xf32>
    %161 = vector.broadcast %cst_22 : f32 to vector<8x16xf32>
    %162 = arith.minimumf %161, %160 : vector<8x16xf32>
    %163 = vector.extract_strided_slice %6 {offsets = [0, 6, 0], sizes = [4, 1, 16], strides = [1, 1, 1]} : vector<4x18x18xbf16> to vector<4x1x16xbf16>
    %164 = vector.shape_cast %163 : vector<4x1x16xbf16> to vector<4x16xbf16>
    %165 = vector.extract_strided_slice %6 {offsets = [0, 6, 1], sizes = [4, 1, 16], strides = [1, 1, 1]} : vector<4x18x18xbf16> to vector<4x1x16xbf16>
    %166 = vector.shape_cast %165 : vector<4x1x16xbf16> to vector<4x16xbf16>
    %167 = vector.extract_strided_slice %6 {offsets = [0, 6, 2], sizes = [4, 1, 16], strides = [1, 1, 1]} : vector<4x18x18xbf16> to vector<4x1x16xbf16>
    %168 = vector.shape_cast %167 : vector<4x1x16xbf16> to vector<4x16xbf16>
    %169 = vector.extract_strided_slice %6 {offsets = [0, 7, 0], sizes = [4, 1, 16], strides = [1, 1, 1]} : vector<4x18x18xbf16> to vector<4x1x16xbf16>
    %170 = vector.shape_cast %169 : vector<4x1x16xbf16> to vector<4x16xbf16>
    %171 = vector.extract_strided_slice %6 {offsets = [0, 7, 1], sizes = [4, 1, 16], strides = [1, 1, 1]} : vector<4x18x18xbf16> to vector<4x1x16xbf16>
    %172 = vector.shape_cast %171 : vector<4x1x16xbf16> to vector<4x16xbf16>
    %173 = vector.extract_strided_slice %6 {offsets = [0, 7, 2], sizes = [4, 1, 16], strides = [1, 1, 1]} : vector<4x18x18xbf16> to vector<4x1x16xbf16>
    %174 = vector.shape_cast %173 : vector<4x1x16xbf16> to vector<4x16xbf16>
    %175 = vector.extract_strided_slice %6 {offsets = [0, 8, 0], sizes = [4, 1, 16], strides = [1, 1, 1]} : vector<4x18x18xbf16> to vector<4x1x16xbf16>
    %176 = vector.shape_cast %175 : vector<4x1x16xbf16> to vector<4x16xbf16>
    %177 = vector.extract_strided_slice %6 {offsets = [0, 8, 1], sizes = [4, 1, 16], strides = [1, 1, 1]} : vector<4x18x18xbf16> to vector<4x1x16xbf16>
    %178 = vector.shape_cast %177 : vector<4x1x16xbf16> to vector<4x16xbf16>
    %179 = vector.extract_strided_slice %6 {offsets = [0, 8, 2], sizes = [4, 1, 16], strides = [1, 1, 1]} : vector<4x18x18xbf16> to vector<4x1x16xbf16>
    %180 = vector.shape_cast %179 : vector<4x1x16xbf16> to vector<4x16xbf16>
    %181 = tpu.concatenate %164, %166, %168, %170, %172, %174, %176, %178, %180 in 0 : vector<4x16xbf16>, vector<4x16xbf16>, vector<4x16xbf16>, vector<4x16xbf16>, vector<4x16xbf16>, vector<4x16xbf16>, vector<4x16xbf16>, vector<4x16xbf16>, vector<4x16xbf16> -> vector<36x16xbf16>
    %cst_23 = arith.constant dense<0.000000e+00> : vector<8x16xf32>
    %182 = tpu.matmul %0, %181, %cst_23 {dimension_numbers = #tpu.dot_dimension_numbers<[1], [0], [0], [1], [0, 0, 1, 1], [], []>} : vector<8x36xbf16>, vector<36x16xbf16>, vector<8x16xf32> -> vector<8x16xf32>
    %183 = vector.broadcast %1 : vector<8x1xf32> to vector<8x16xf32>
    %184 = arith.addf %182, %183 : vector<8x16xf32>
    %cst_24 = arith.constant 0.000000e+00 : f32
    %cst_25 = arith.constant 6.000000e+00 : f32
    %185 = vector.broadcast %cst_24 : f32 to vector<8x16xf32>
    %186 = arith.maximumf %185, %184 : vector<8x16xf32>
    %187 = vector.broadcast %cst_25 : f32 to vector<8x16xf32>
    %188 = arith.minimumf %187, %186 : vector<8x16xf32>
    %189 = vector.extract_strided_slice %6 {offsets = [0, 7, 0], sizes = [4, 1, 16], strides = [1, 1, 1]} : vector<4x18x18xbf16> to vector<4x1x16xbf16>
    %190 = vector.shape_cast %189 : vector<4x1x16xbf16> to vector<4x16xbf16>
    %191 = vector.extract_strided_slice %6 {offsets = [0, 7, 1], sizes = [4, 1, 16], strides = [1, 1, 1]} : vector<4x18x18xbf16> to vector<4x1x16xbf16>
    %192 = vector.shape_cast %191 : vector<4x1x16xbf16> to vector<4x16xbf16>
    %193 = vector.extract_strided_slice %6 {offsets = [0, 7, 2], sizes = [4, 1, 16], strides = [1, 1, 1]} : vector<4x18x18xbf16> to vector<4x1x16xbf16>
    %194 = vector.shape_cast %193 : vector<4x1x16xbf16> to vector<4x16xbf16>
    %195 = vector.extract_strided_slice %6 {offsets = [0, 8, 0], sizes = [4, 1, 16], strides = [1, 1, 1]} : vector<4x18x18xbf16> to vector<4x1x16xbf16>
    %196 = vector.shape_cast %195 : vector<4x1x16xbf16> to vector<4x16xbf16>
    %197 = vector.extract_strided_slice %6 {offsets = [0, 8, 1], sizes = [4, 1, 16], strides = [1, 1, 1]} : vector<4x18x18xbf16> to vector<4x1x16xbf16>
    %198 = vector.shape_cast %197 : vector<4x1x16xbf16> to vector<4x16xbf16>
    %199 = vector.extract_strided_slice %6 {offsets = [0, 8, 2], sizes = [4, 1, 16], strides = [1, 1, 1]} : vector<4x18x18xbf16> to vector<4x1x16xbf16>
    %200 = vector.shape_cast %199 : vector<4x1x16xbf16> to vector<4x16xbf16>
    %201 = vector.extract_strided_slice %6 {offsets = [0, 9, 0], sizes = [4, 1, 16], strides = [1, 1, 1]} : vector<4x18x18xbf16> to vector<4x1x16xbf16>
    %202 = vector.shape_cast %201 : vector<4x1x16xbf16> to vector<4x16xbf16>
    %203 = vector.extract_strided_slice %6 {offsets = [0, 9, 1], sizes = [4, 1, 16], strides = [1, 1, 1]} : vector<4x18x18xbf16> to vector<4x1x16xbf16>
    %204 = vector.shape_cast %203 : vector<4x1x16xbf16> to vector<4x16xbf16>
    %205 = vector.extract_strided_slice %6 {offsets = [0, 9, 2], sizes = [4, 1, 16], strides = [1, 1, 1]} : vector<4x18x18xbf16> to vector<4x1x16xbf16>
    %206 = vector.shape_cast %205 : vector<4x1x16xbf16> to vector<4x16xbf16>
    %207 = tpu.concatenate %190, %192, %194, %196, %198, %200, %202, %204, %206 in 0 : vector<4x16xbf16>, vector<4x16xbf16>, vector<4x16xbf16>, vector<4x16xbf16>, vector<4x16xbf16>, vector<4x16xbf16>, vector<4x16xbf16>, vector<4x16xbf16>, vector<4x16xbf16> -> vector<36x16xbf16>
    %cst_26 = arith.constant dense<0.000000e+00> : vector<8x16xf32>
    %208 = tpu.matmul %0, %207, %cst_26 {dimension_numbers = #tpu.dot_dimension_numbers<[1], [0], [0], [1], [0, 0, 1, 1], [], []>} : vector<8x36xbf16>, vector<36x16xbf16>, vector<8x16xf32> -> vector<8x16xf32>
    %209 = vector.broadcast %1 : vector<8x1xf32> to vector<8x16xf32>
    %210 = arith.addf %208, %209 : vector<8x16xf32>
    %cst_27 = arith.constant 0.000000e+00 : f32
    %cst_28 = arith.constant 6.000000e+00 : f32
    %211 = vector.broadcast %cst_27 : f32 to vector<8x16xf32>
    %212 = arith.maximumf %211, %210 : vector<8x16xf32>
    %213 = vector.broadcast %cst_28 : f32 to vector<8x16xf32>
    %214 = arith.minimumf %213, %212 : vector<8x16xf32>
    %215 = vector.extract_strided_slice %6 {offsets = [0, 8, 0], sizes = [4, 1, 16], strides = [1, 1, 1]} : vector<4x18x18xbf16> to vector<4x1x16xbf16>
    %216 = vector.shape_cast %215 : vector<4x1x16xbf16> to vector<4x16xbf16>
    %217 = vector.extract_strided_slice %6 {offsets = [0, 8, 1], sizes = [4, 1, 16], strides = [1, 1, 1]} : vector<4x18x18xbf16> to vector<4x1x16xbf16>
    %218 = vector.shape_cast %217 : vector<4x1x16xbf16> to vector<4x16xbf16>
    %219 = vector.extract_strided_slice %6 {offsets = [0, 8, 2], sizes = [4, 1, 16], strides = [1, 1, 1]} : vector<4x18x18xbf16> to vector<4x1x16xbf16>
    %220 = vector.shape_cast %219 : vector<4x1x16xbf16> to vector<4x16xbf16>
    %221 = vector.extract_strided_slice %6 {offsets = [0, 9, 0], sizes = [4, 1, 16], strides = [1, 1, 1]} : vector<4x18x18xbf16> to vector<4x1x16xbf16>
    %222 = vector.shape_cast %221 : vector<4x1x16xbf16> to vector<4x16xbf16>
    %223 = vector.extract_strided_slice %6 {offsets = [0, 9, 1], sizes = [4, 1, 16], strides = [1, 1, 1]} : vector<4x18x18xbf16> to vector<4x1x16xbf16>
    %224 = vector.shape_cast %223 : vector<4x1x16xbf16> to vector<4x16xbf16>
    %225 = vector.extract_strided_slice %6 {offsets = [0, 9, 2], sizes = [4, 1, 16], strides = [1, 1, 1]} : vector<4x18x18xbf16> to vector<4x1x16xbf16>
    %226 = vector.shape_cast %225 : vector<4x1x16xbf16> to vector<4x16xbf16>
    %227 = vector.extract_strided_slice %6 {offsets = [0, 10, 0], sizes = [4, 1, 16], strides = [1, 1, 1]} : vector<4x18x18xbf16> to vector<4x1x16xbf16>
    %228 = vector.shape_cast %227 : vector<4x1x16xbf16> to vector<4x16xbf16>
    %229 = vector.extract_strided_slice %6 {offsets = [0, 10, 1], sizes = [4, 1, 16], strides = [1, 1, 1]} : vector<4x18x18xbf16> to vector<4x1x16xbf16>
    %230 = vector.shape_cast %229 : vector<4x1x16xbf16> to vector<4x16xbf16>
    %231 = vector.extract_strided_slice %6 {offsets = [0, 10, 2], sizes = [4, 1, 16], strides = [1, 1, 1]} : vector<4x18x18xbf16> to vector<4x1x16xbf16>
    %232 = vector.shape_cast %231 : vector<4x1x16xbf16> to vector<4x16xbf16>
    %233 = tpu.concatenate %216, %218, %220, %222, %224, %226, %228, %230, %232 in 0 : vector<4x16xbf16>, vector<4x16xbf16>, vector<4x16xbf16>, vector<4x16xbf16>, vector<4x16xbf16>, vector<4x16xbf16>, vector<4x16xbf16>, vector<4x16xbf16>, vector<4x16xbf16> -> vector<36x16xbf16>
    %cst_29 = arith.constant dense<0.000000e+00> : vector<8x16xf32>
    %234 = tpu.matmul %0, %233, %cst_29 {dimension_numbers = #tpu.dot_dimension_numbers<[1], [0], [0], [1], [0, 0, 1, 1], [], []>} : vector<8x36xbf16>, vector<36x16xbf16>, vector<8x16xf32> -> vector<8x16xf32>
    %235 = vector.broadcast %1 : vector<8x1xf32> to vector<8x16xf32>
    %236 = arith.addf %234, %235 : vector<8x16xf32>
    %cst_30 = arith.constant 0.000000e+00 : f32
    %cst_31 = arith.constant 6.000000e+00 : f32
    %237 = vector.broadcast %cst_30 : f32 to vector<8x16xf32>
    %238 = arith.maximumf %237, %236 : vector<8x16xf32>
    %239 = vector.broadcast %cst_31 : f32 to vector<8x16xf32>
    %240 = arith.minimumf %239, %238 : vector<8x16xf32>
    %241 = vector.extract_strided_slice %6 {offsets = [0, 9, 0], sizes = [4, 1, 16], strides = [1, 1, 1]} : vector<4x18x18xbf16> to vector<4x1x16xbf16>
    %242 = vector.shape_cast %241 : vector<4x1x16xbf16> to vector<4x16xbf16>
    %243 = vector.extract_strided_slice %6 {offsets = [0, 9, 1], sizes = [4, 1, 16], strides = [1, 1, 1]} : vector<4x18x18xbf16> to vector<4x1x16xbf16>
    %244 = vector.shape_cast %243 : vector<4x1x16xbf16> to vector<4x16xbf16>
    %245 = vector.extract_strided_slice %6 {offsets = [0, 9, 2], sizes = [4, 1, 16], strides = [1, 1, 1]} : vector<4x18x18xbf16> to vector<4x1x16xbf16>
    %246 = vector.shape_cast %245 : vector<4x1x16xbf16> to vector<4x16xbf16>
    %247 = vector.extract_strided_slice %6 {offsets = [0, 10, 0], sizes = [4, 1, 16], strides = [1, 1, 1]} : vector<4x18x18xbf16> to vector<4x1x16xbf16>
    %248 = vector.shape_cast %247 : vector<4x1x16xbf16> to vector<4x16xbf16>
    %249 = vector.extract_strided_slice %6 {offsets = [0, 10, 1], sizes = [4, 1, 16], strides = [1, 1, 1]} : vector<4x18x18xbf16> to vector<4x1x16xbf16>
    %250 = vector.shape_cast %249 : vector<4x1x16xbf16> to vector<4x16xbf16>
    %251 = vector.extract_strided_slice %6 {offsets = [0, 10, 2], sizes = [4, 1, 16], strides = [1, 1, 1]} : vector<4x18x18xbf16> to vector<4x1x16xbf16>
    %252 = vector.shape_cast %251 : vector<4x1x16xbf16> to vector<4x16xbf16>
    %253 = vector.extract_strided_slice %6 {offsets = [0, 11, 0], sizes = [4, 1, 16], strides = [1, 1, 1]} : vector<4x18x18xbf16> to vector<4x1x16xbf16>
    %254 = vector.shape_cast %253 : vector<4x1x16xbf16> to vector<4x16xbf16>
    %255 = vector.extract_strided_slice %6 {offsets = [0, 11, 1], sizes = [4, 1, 16], strides = [1, 1, 1]} : vector<4x18x18xbf16> to vector<4x1x16xbf16>
    %256 = vector.shape_cast %255 : vector<4x1x16xbf16> to vector<4x16xbf16>
    %257 = vector.extract_strided_slice %6 {offsets = [0, 11, 2], sizes = [4, 1, 16], strides = [1, 1, 1]} : vector<4x18x18xbf16> to vector<4x1x16xbf16>
    %258 = vector.shape_cast %257 : vector<4x1x16xbf16> to vector<4x16xbf16>
    %259 = tpu.concatenate %242, %244, %246, %248, %250, %252, %254, %256, %258 in 0 : vector<4x16xbf16>, vector<4x16xbf16>, vector<4x16xbf16>, vector<4x16xbf16>, vector<4x16xbf16>, vector<4x16xbf16>, vector<4x16xbf16>, vector<4x16xbf16>, vector<4x16xbf16> -> vector<36x16xbf16>
    %cst_32 = arith.constant dense<0.000000e+00> : vector<8x16xf32>
    %260 = tpu.matmul %0, %259, %cst_32 {dimension_numbers = #tpu.dot_dimension_numbers<[1], [0], [0], [1], [0, 0, 1, 1], [], []>} : vector<8x36xbf16>, vector<36x16xbf16>, vector<8x16xf32> -> vector<8x16xf32>
    %261 = vector.broadcast %1 : vector<8x1xf32> to vector<8x16xf32>
    %262 = arith.addf %260, %261 : vector<8x16xf32>
    %cst_33 = arith.constant 0.000000e+00 : f32
    %cst_34 = arith.constant 6.000000e+00 : f32
    %263 = vector.broadcast %cst_33 : f32 to vector<8x16xf32>
    %264 = arith.maximumf %263, %262 : vector<8x16xf32>
    %265 = vector.broadcast %cst_34 : f32 to vector<8x16xf32>
    %266 = arith.minimumf %265, %264 : vector<8x16xf32>
    %267 = vector.extract_strided_slice %6 {offsets = [0, 10, 0], sizes = [4, 1, 16], strides = [1, 1, 1]} : vector<4x18x18xbf16> to vector<4x1x16xbf16>
    %268 = vector.shape_cast %267 : vector<4x1x16xbf16> to vector<4x16xbf16>
    %269 = vector.extract_strided_slice %6 {offsets = [0, 10, 1], sizes = [4, 1, 16], strides = [1, 1, 1]} : vector<4x18x18xbf16> to vector<4x1x16xbf16>
    %270 = vector.shape_cast %269 : vector<4x1x16xbf16> to vector<4x16xbf16>
    %271 = vector.extract_strided_slice %6 {offsets = [0, 10, 2], sizes = [4, 1, 16], strides = [1, 1, 1]} : vector<4x18x18xbf16> to vector<4x1x16xbf16>
    %272 = vector.shape_cast %271 : vector<4x1x16xbf16> to vector<4x16xbf16>
    %273 = vector.extract_strided_slice %6 {offsets = [0, 11, 0], sizes = [4, 1, 16], strides = [1, 1, 1]} : vector<4x18x18xbf16> to vector<4x1x16xbf16>
    %274 = vector.shape_cast %273 : vector<4x1x16xbf16> to vector<4x16xbf16>
    %275 = vector.extract_strided_slice %6 {offsets = [0, 11, 1], sizes = [4, 1, 16], strides = [1, 1, 1]} : vector<4x18x18xbf16> to vector<4x1x16xbf16>
    %276 = vector.shape_cast %275 : vector<4x1x16xbf16> to vector<4x16xbf16>
    %277 = vector.extract_strided_slice %6 {offsets = [0, 11, 2], sizes = [4, 1, 16], strides = [1, 1, 1]} : vector<4x18x18xbf16> to vector<4x1x16xbf16>
    %278 = vector.shape_cast %277 : vector<4x1x16xbf16> to vector<4x16xbf16>
    %279 = vector.extract_strided_slice %6 {offsets = [0, 12, 0], sizes = [4, 1, 16], strides = [1, 1, 1]} : vector<4x18x18xbf16> to vector<4x1x16xbf16>
    %280 = vector.shape_cast %279 : vector<4x1x16xbf16> to vector<4x16xbf16>
    %281 = vector.extract_strided_slice %6 {offsets = [0, 12, 1], sizes = [4, 1, 16], strides = [1, 1, 1]} : vector<4x18x18xbf16> to vector<4x1x16xbf16>
    %282 = vector.shape_cast %281 : vector<4x1x16xbf16> to vector<4x16xbf16>
    %283 = vector.extract_strided_slice %6 {offsets = [0, 12, 2], sizes = [4, 1, 16], strides = [1, 1, 1]} : vector<4x18x18xbf16> to vector<4x1x16xbf16>
    %284 = vector.shape_cast %283 : vector<4x1x16xbf16> to vector<4x16xbf16>
    %285 = tpu.concatenate %268, %270, %272, %274, %276, %278, %280, %282, %284 in 0 : vector<4x16xbf16>, vector<4x16xbf16>, vector<4x16xbf16>, vector<4x16xbf16>, vector<4x16xbf16>, vector<4x16xbf16>, vector<4x16xbf16>, vector<4x16xbf16>, vector<4x16xbf16> -> vector<36x16xbf16>
    %cst_35 = arith.constant dense<0.000000e+00> : vector<8x16xf32>
    %286 = tpu.matmul %0, %285, %cst_35 {dimension_numbers = #tpu.dot_dimension_numbers<[1], [0], [0], [1], [0, 0, 1, 1], [], []>} : vector<8x36xbf16>, vector<36x16xbf16>, vector<8x16xf32> -> vector<8x16xf32>
    %287 = vector.broadcast %1 : vector<8x1xf32> to vector<8x16xf32>
    %288 = arith.addf %286, %287 : vector<8x16xf32>
    %cst_36 = arith.constant 0.000000e+00 : f32
    %cst_37 = arith.constant 6.000000e+00 : f32
    %289 = vector.broadcast %cst_36 : f32 to vector<8x16xf32>
    %290 = arith.maximumf %289, %288 : vector<8x16xf32>
    %291 = vector.broadcast %cst_37 : f32 to vector<8x16xf32>
    %292 = arith.minimumf %291, %290 : vector<8x16xf32>
    %293 = vector.extract_strided_slice %6 {offsets = [0, 11, 0], sizes = [4, 1, 16], strides = [1, 1, 1]} : vector<4x18x18xbf16> to vector<4x1x16xbf16>
    %294 = vector.shape_cast %293 : vector<4x1x16xbf16> to vector<4x16xbf16>
    %295 = vector.extract_strided_slice %6 {offsets = [0, 11, 1], sizes = [4, 1, 16], strides = [1, 1, 1]} : vector<4x18x18xbf16> to vector<4x1x16xbf16>
    %296 = vector.shape_cast %295 : vector<4x1x16xbf16> to vector<4x16xbf16>
    %297 = vector.extract_strided_slice %6 {offsets = [0, 11, 2], sizes = [4, 1, 16], strides = [1, 1, 1]} : vector<4x18x18xbf16> to vector<4x1x16xbf16>
    %298 = vector.shape_cast %297 : vector<4x1x16xbf16> to vector<4x16xbf16>
    %299 = vector.extract_strided_slice %6 {offsets = [0, 12, 0], sizes = [4, 1, 16], strides = [1, 1, 1]} : vector<4x18x18xbf16> to vector<4x1x16xbf16>
    %300 = vector.shape_cast %299 : vector<4x1x16xbf16> to vector<4x16xbf16>
    %301 = vector.extract_strided_slice %6 {offsets = [0, 12, 1], sizes = [4, 1, 16], strides = [1, 1, 1]} : vector<4x18x18xbf16> to vector<4x1x16xbf16>
    %302 = vector.shape_cast %301 : vector<4x1x16xbf16> to vector<4x16xbf16>
    %303 = vector.extract_strided_slice %6 {offsets = [0, 12, 2], sizes = [4, 1, 16], strides = [1, 1, 1]} : vector<4x18x18xbf16> to vector<4x1x16xbf16>
    %304 = vector.shape_cast %303 : vector<4x1x16xbf16> to vector<4x16xbf16>
    %305 = vector.extract_strided_slice %6 {offsets = [0, 13, 0], sizes = [4, 1, 16], strides = [1, 1, 1]} : vector<4x18x18xbf16> to vector<4x1x16xbf16>
    %306 = vector.shape_cast %305 : vector<4x1x16xbf16> to vector<4x16xbf16>
    %307 = vector.extract_strided_slice %6 {offsets = [0, 13, 1], sizes = [4, 1, 16], strides = [1, 1, 1]} : vector<4x18x18xbf16> to vector<4x1x16xbf16>
    %308 = vector.shape_cast %307 : vector<4x1x16xbf16> to vector<4x16xbf16>
    %309 = vector.extract_strided_slice %6 {offsets = [0, 13, 2], sizes = [4, 1, 16], strides = [1, 1, 1]} : vector<4x18x18xbf16> to vector<4x1x16xbf16>
    %310 = vector.shape_cast %309 : vector<4x1x16xbf16> to vector<4x16xbf16>
    %311 = tpu.concatenate %294, %296, %298, %300, %302, %304, %306, %308, %310 in 0 : vector<4x16xbf16>, vector<4x16xbf16>, vector<4x16xbf16>, vector<4x16xbf16>, vector<4x16xbf16>, vector<4x16xbf16>, vector<4x16xbf16>, vector<4x16xbf16>, vector<4x16xbf16> -> vector<36x16xbf16>
    %cst_38 = arith.constant dense<0.000000e+00> : vector<8x16xf32>
    %312 = tpu.matmul %0, %311, %cst_38 {dimension_numbers = #tpu.dot_dimension_numbers<[1], [0], [0], [1], [0, 0, 1, 1], [], []>} : vector<8x36xbf16>, vector<36x16xbf16>, vector<8x16xf32> -> vector<8x16xf32>
    %313 = vector.broadcast %1 : vector<8x1xf32> to vector<8x16xf32>
    %314 = arith.addf %312, %313 : vector<8x16xf32>
    %cst_39 = arith.constant 0.000000e+00 : f32
    %cst_40 = arith.constant 6.000000e+00 : f32
    %315 = vector.broadcast %cst_39 : f32 to vector<8x16xf32>
    %316 = arith.maximumf %315, %314 : vector<8x16xf32>
    %317 = vector.broadcast %cst_40 : f32 to vector<8x16xf32>
    %318 = arith.minimumf %317, %316 : vector<8x16xf32>
    %319 = vector.extract_strided_slice %6 {offsets = [0, 12, 0], sizes = [4, 1, 16], strides = [1, 1, 1]} : vector<4x18x18xbf16> to vector<4x1x16xbf16>
    %320 = vector.shape_cast %319 : vector<4x1x16xbf16> to vector<4x16xbf16>
    %321 = vector.extract_strided_slice %6 {offsets = [0, 12, 1], sizes = [4, 1, 16], strides = [1, 1, 1]} : vector<4x18x18xbf16> to vector<4x1x16xbf16>
    %322 = vector.shape_cast %321 : vector<4x1x16xbf16> to vector<4x16xbf16>
    %323 = vector.extract_strided_slice %6 {offsets = [0, 12, 2], sizes = [4, 1, 16], strides = [1, 1, 1]} : vector<4x18x18xbf16> to vector<4x1x16xbf16>
    %324 = vector.shape_cast %323 : vector<4x1x16xbf16> to vector<4x16xbf16>
    %325 = vector.extract_strided_slice %6 {offsets = [0, 13, 0], sizes = [4, 1, 16], strides = [1, 1, 1]} : vector<4x18x18xbf16> to vector<4x1x16xbf16>
    %326 = vector.shape_cast %325 : vector<4x1x16xbf16> to vector<4x16xbf16>
    %327 = vector.extract_strided_slice %6 {offsets = [0, 13, 1], sizes = [4, 1, 16], strides = [1, 1, 1]} : vector<4x18x18xbf16> to vector<4x1x16xbf16>
    %328 = vector.shape_cast %327 : vector<4x1x16xbf16> to vector<4x16xbf16>
    %329 = vector.extract_strided_slice %6 {offsets = [0, 13, 2], sizes = [4, 1, 16], strides = [1, 1, 1]} : vector<4x18x18xbf16> to vector<4x1x16xbf16>
    %330 = vector.shape_cast %329 : vector<4x1x16xbf16> to vector<4x16xbf16>
    %331 = vector.extract_strided_slice %6 {offsets = [0, 14, 0], sizes = [4, 1, 16], strides = [1, 1, 1]} : vector<4x18x18xbf16> to vector<4x1x16xbf16>
    %332 = vector.shape_cast %331 : vector<4x1x16xbf16> to vector<4x16xbf16>
    %333 = vector.extract_strided_slice %6 {offsets = [0, 14, 1], sizes = [4, 1, 16], strides = [1, 1, 1]} : vector<4x18x18xbf16> to vector<4x1x16xbf16>
    %334 = vector.shape_cast %333 : vector<4x1x16xbf16> to vector<4x16xbf16>
    %335 = vector.extract_strided_slice %6 {offsets = [0, 14, 2], sizes = [4, 1, 16], strides = [1, 1, 1]} : vector<4x18x18xbf16> to vector<4x1x16xbf16>
    %336 = vector.shape_cast %335 : vector<4x1x16xbf16> to vector<4x16xbf16>
    %337 = tpu.concatenate %320, %322, %324, %326, %328, %330, %332, %334, %336 in 0 : vector<4x16xbf16>, vector<4x16xbf16>, vector<4x16xbf16>, vector<4x16xbf16>, vector<4x16xbf16>, vector<4x16xbf16>, vector<4x16xbf16>, vector<4x16xbf16>, vector<4x16xbf16> -> vector<36x16xbf16>
    %cst_41 = arith.constant dense<0.000000e+00> : vector<8x16xf32>
    %338 = tpu.matmul %0, %337, %cst_41 {dimension_numbers = #tpu.dot_dimension_numbers<[1], [0], [0], [1], [0, 0, 1, 1], [], []>} : vector<8x36xbf16>, vector<36x16xbf16>, vector<8x16xf32> -> vector<8x16xf32>
    %339 = vector.broadcast %1 : vector<8x1xf32> to vector<8x16xf32>
    %340 = arith.addf %338, %339 : vector<8x16xf32>
    %cst_42 = arith.constant 0.000000e+00 : f32
    %cst_43 = arith.constant 6.000000e+00 : f32
    %341 = vector.broadcast %cst_42 : f32 to vector<8x16xf32>
    %342 = arith.maximumf %341, %340 : vector<8x16xf32>
    %343 = vector.broadcast %cst_43 : f32 to vector<8x16xf32>
    %344 = arith.minimumf %343, %342 : vector<8x16xf32>
    %345 = vector.extract_strided_slice %6 {offsets = [0, 13, 0], sizes = [4, 1, 16], strides = [1, 1, 1]} : vector<4x18x18xbf16> to vector<4x1x16xbf16>
    %346 = vector.shape_cast %345 : vector<4x1x16xbf16> to vector<4x16xbf16>
    %347 = vector.extract_strided_slice %6 {offsets = [0, 13, 1], sizes = [4, 1, 16], strides = [1, 1, 1]} : vector<4x18x18xbf16> to vector<4x1x16xbf16>
    %348 = vector.shape_cast %347 : vector<4x1x16xbf16> to vector<4x16xbf16>
    %349 = vector.extract_strided_slice %6 {offsets = [0, 13, 2], sizes = [4, 1, 16], strides = [1, 1, 1]} : vector<4x18x18xbf16> to vector<4x1x16xbf16>
    %350 = vector.shape_cast %349 : vector<4x1x16xbf16> to vector<4x16xbf16>
    %351 = vector.extract_strided_slice %6 {offsets = [0, 14, 0], sizes = [4, 1, 16], strides = [1, 1, 1]} : vector<4x18x18xbf16> to vector<4x1x16xbf16>
    %352 = vector.shape_cast %351 : vector<4x1x16xbf16> to vector<4x16xbf16>
    %353 = vector.extract_strided_slice %6 {offsets = [0, 14, 1], sizes = [4, 1, 16], strides = [1, 1, 1]} : vector<4x18x18xbf16> to vector<4x1x16xbf16>
    %354 = vector.shape_cast %353 : vector<4x1x16xbf16> to vector<4x16xbf16>
    %355 = vector.extract_strided_slice %6 {offsets = [0, 14, 2], sizes = [4, 1, 16], strides = [1, 1, 1]} : vector<4x18x18xbf16> to vector<4x1x16xbf16>
    %356 = vector.shape_cast %355 : vector<4x1x16xbf16> to vector<4x16xbf16>
    %357 = vector.extract_strided_slice %6 {offsets = [0, 15, 0], sizes = [4, 1, 16], strides = [1, 1, 1]} : vector<4x18x18xbf16> to vector<4x1x16xbf16>
    %358 = vector.shape_cast %357 : vector<4x1x16xbf16> to vector<4x16xbf16>
    %359 = vector.extract_strided_slice %6 {offsets = [0, 15, 1], sizes = [4, 1, 16], strides = [1, 1, 1]} : vector<4x18x18xbf16> to vector<4x1x16xbf16>
    %360 = vector.shape_cast %359 : vector<4x1x16xbf16> to vector<4x16xbf16>
    %361 = vector.extract_strided_slice %6 {offsets = [0, 15, 2], sizes = [4, 1, 16], strides = [1, 1, 1]} : vector<4x18x18xbf16> to vector<4x1x16xbf16>
    %362 = vector.shape_cast %361 : vector<4x1x16xbf16> to vector<4x16xbf16>
    %363 = tpu.concatenate %346, %348, %350, %352, %354, %356, %358, %360, %362 in 0 : vector<4x16xbf16>, vector<4x16xbf16>, vector<4x16xbf16>, vector<4x16xbf16>, vector<4x16xbf16>, vector<4x16xbf16>, vector<4x16xbf16>, vector<4x16xbf16>, vector<4x16xbf16> -> vector<36x16xbf16>
    %cst_44 = arith.constant dense<0.000000e+00> : vector<8x16xf32>
    %364 = tpu.matmul %0, %363, %cst_44 {dimension_numbers = #tpu.dot_dimension_numbers<[1], [0], [0], [1], [0, 0, 1, 1], [], []>} : vector<8x36xbf16>, vector<36x16xbf16>, vector<8x16xf32> -> vector<8x16xf32>
    %365 = vector.broadcast %1 : vector<8x1xf32> to vector<8x16xf32>
    %366 = arith.addf %364, %365 : vector<8x16xf32>
    %cst_45 = arith.constant 0.000000e+00 : f32
    %cst_46 = arith.constant 6.000000e+00 : f32
    %367 = vector.broadcast %cst_45 : f32 to vector<8x16xf32>
    %368 = arith.maximumf %367, %366 : vector<8x16xf32>
    %369 = vector.broadcast %cst_46 : f32 to vector<8x16xf32>
    %370 = arith.minimumf %369, %368 : vector<8x16xf32>
    %371 = vector.extract_strided_slice %6 {offsets = [0, 14, 0], sizes = [4, 1, 16], strides = [1, 1, 1]} : vector<4x18x18xbf16> to vector<4x1x16xbf16>
    %372 = vector.shape_cast %371 : vector<4x1x16xbf16> to vector<4x16xbf16>
    %373 = vector.extract_strided_slice %6 {offsets = [0, 14, 1], sizes = [4, 1, 16], strides = [1, 1, 1]} : vector<4x18x18xbf16> to vector<4x1x16xbf16>
    %374 = vector.shape_cast %373 : vector<4x1x16xbf16> to vector<4x16xbf16>
    %375 = vector.extract_strided_slice %6 {offsets = [0, 14, 2], sizes = [4, 1, 16], strides = [1, 1, 1]} : vector<4x18x18xbf16> to vector<4x1x16xbf16>
    %376 = vector.shape_cast %375 : vector<4x1x16xbf16> to vector<4x16xbf16>
    %377 = vector.extract_strided_slice %6 {offsets = [0, 15, 0], sizes = [4, 1, 16], strides = [1, 1, 1]} : vector<4x18x18xbf16> to vector<4x1x16xbf16>
    %378 = vector.shape_cast %377 : vector<4x1x16xbf16> to vector<4x16xbf16>
    %379 = vector.extract_strided_slice %6 {offsets = [0, 15, 1], sizes = [4, 1, 16], strides = [1, 1, 1]} : vector<4x18x18xbf16> to vector<4x1x16xbf16>
    %380 = vector.shape_cast %379 : vector<4x1x16xbf16> to vector<4x16xbf16>
    %381 = vector.extract_strided_slice %6 {offsets = [0, 15, 2], sizes = [4, 1, 16], strides = [1, 1, 1]} : vector<4x18x18xbf16> to vector<4x1x16xbf16>
    %382 = vector.shape_cast %381 : vector<4x1x16xbf16> to vector<4x16xbf16>
    %383 = vector.extract_strided_slice %6 {offsets = [0, 16, 0], sizes = [4, 1, 16], strides = [1, 1, 1]} : vector<4x18x18xbf16> to vector<4x1x16xbf16>
    %384 = vector.shape_cast %383 : vector<4x1x16xbf16> to vector<4x16xbf16>
    %385 = vector.extract_strided_slice %6 {offsets = [0, 16, 1], sizes = [4, 1, 16], strides = [1, 1, 1]} : vector<4x18x18xbf16> to vector<4x1x16xbf16>
    %386 = vector.shape_cast %385 : vector<4x1x16xbf16> to vector<4x16xbf16>
    %387 = vector.extract_strided_slice %6 {offsets = [0, 16, 2], sizes = [4, 1, 16], strides = [1, 1, 1]} : vector<4x18x18xbf16> to vector<4x1x16xbf16>
    %388 = vector.shape_cast %387 : vector<4x1x16xbf16> to vector<4x16xbf16>
    %389 = tpu.concatenate %372, %374, %376, %378, %380, %382, %384, %386, %388 in 0 : vector<4x16xbf16>, vector<4x16xbf16>, vector<4x16xbf16>, vector<4x16xbf16>, vector<4x16xbf16>, vector<4x16xbf16>, vector<4x16xbf16>, vector<4x16xbf16>, vector<4x16xbf16> -> vector<36x16xbf16>
    %cst_47 = arith.constant dense<0.000000e+00> : vector<8x16xf32>
    %390 = tpu.matmul %0, %389, %cst_47 {dimension_numbers = #tpu.dot_dimension_numbers<[1], [0], [0], [1], [0, 0, 1, 1], [], []>} : vector<8x36xbf16>, vector<36x16xbf16>, vector<8x16xf32> -> vector<8x16xf32>
    %391 = vector.broadcast %1 : vector<8x1xf32> to vector<8x16xf32>
    %392 = arith.addf %390, %391 : vector<8x16xf32>
    %cst_48 = arith.constant 0.000000e+00 : f32
    %cst_49 = arith.constant 6.000000e+00 : f32
    %393 = vector.broadcast %cst_48 : f32 to vector<8x16xf32>
    %394 = arith.maximumf %393, %392 : vector<8x16xf32>
    %395 = vector.broadcast %cst_49 : f32 to vector<8x16xf32>
    %396 = arith.minimumf %395, %394 : vector<8x16xf32>
    %397 = vector.extract_strided_slice %6 {offsets = [0, 15, 0], sizes = [4, 1, 16], strides = [1, 1, 1]} : vector<4x18x18xbf16> to vector<4x1x16xbf16>
    %398 = vector.shape_cast %397 : vector<4x1x16xbf16> to vector<4x16xbf16>
    %399 = vector.extract_strided_slice %6 {offsets = [0, 15, 1], sizes = [4, 1, 16], strides = [1, 1, 1]} : vector<4x18x18xbf16> to vector<4x1x16xbf16>
    %400 = vector.shape_cast %399 : vector<4x1x16xbf16> to vector<4x16xbf16>
    %401 = vector.extract_strided_slice %6 {offsets = [0, 15, 2], sizes = [4, 1, 16], strides = [1, 1, 1]} : vector<4x18x18xbf16> to vector<4x1x16xbf16>
    %402 = vector.shape_cast %401 : vector<4x1x16xbf16> to vector<4x16xbf16>
    %403 = vector.extract_strided_slice %6 {offsets = [0, 16, 0], sizes = [4, 1, 16], strides = [1, 1, 1]} : vector<4x18x18xbf16> to vector<4x1x16xbf16>
    %404 = vector.shape_cast %403 : vector<4x1x16xbf16> to vector<4x16xbf16>
    %405 = vector.extract_strided_slice %6 {offsets = [0, 16, 1], sizes = [4, 1, 16], strides = [1, 1, 1]} : vector<4x18x18xbf16> to vector<4x1x16xbf16>
    %406 = vector.shape_cast %405 : vector<4x1x16xbf16> to vector<4x16xbf16>
    %407 = vector.extract_strided_slice %6 {offsets = [0, 16, 2], sizes = [4, 1, 16], strides = [1, 1, 1]} : vector<4x18x18xbf16> to vector<4x1x16xbf16>
    %408 = vector.shape_cast %407 : vector<4x1x16xbf16> to vector<4x16xbf16>
    %409 = vector.extract_strided_slice %6 {offsets = [0, 17, 0], sizes = [4, 1, 16], strides = [1, 1, 1]} : vector<4x18x18xbf16> to vector<4x1x16xbf16>
    %410 = vector.shape_cast %409 : vector<4x1x16xbf16> to vector<4x16xbf16>
    %411 = vector.extract_strided_slice %6 {offsets = [0, 17, 1], sizes = [4, 1, 16], strides = [1, 1, 1]} : vector<4x18x18xbf16> to vector<4x1x16xbf16>
    %412 = vector.shape_cast %411 : vector<4x1x16xbf16> to vector<4x16xbf16>
    %413 = vector.extract_strided_slice %6 {offsets = [0, 17, 2], sizes = [4, 1, 16], strides = [1, 1, 1]} : vector<4x18x18xbf16> to vector<4x1x16xbf16>
    %414 = vector.shape_cast %413 : vector<4x1x16xbf16> to vector<4x16xbf16>
    %415 = tpu.concatenate %398, %400, %402, %404, %406, %408, %410, %412, %414 in 0 : vector<4x16xbf16>, vector<4x16xbf16>, vector<4x16xbf16>, vector<4x16xbf16>, vector<4x16xbf16>, vector<4x16xbf16>, vector<4x16xbf16>, vector<4x16xbf16>, vector<4x16xbf16> -> vector<36x16xbf16>
    %cst_50 = arith.constant dense<0.000000e+00> : vector<8x16xf32>
    %416 = tpu.matmul %0, %415, %cst_50 {dimension_numbers = #tpu.dot_dimension_numbers<[1], [0], [0], [1], [0, 0, 1, 1], [], []>} : vector<8x36xbf16>, vector<36x16xbf16>, vector<8x16xf32> -> vector<8x16xf32>
    %417 = vector.broadcast %1 : vector<8x1xf32> to vector<8x16xf32>
    %418 = arith.addf %416, %417 : vector<8x16xf32>
    %cst_51 = arith.constant 0.000000e+00 : f32
    %cst_52 = arith.constant 6.000000e+00 : f32
    %419 = vector.broadcast %cst_51 : f32 to vector<8x16xf32>
    %420 = arith.maximumf %419, %418 : vector<8x16xf32>
    %421 = vector.broadcast %cst_52 : f32 to vector<8x16xf32>
    %422 = arith.minimumf %421, %420 : vector<8x16xf32>
    %423 = tpu.concatenate %32, %58, %84, %110, %136, %162, %188, %214, %240, %266, %292, %318, %344, %370, %396, %422 in 1 : vector<8x16xf32>, vector<8x16xf32>, vector<8x16xf32>, vector<8x16xf32>, vector<8x16xf32>, vector<8x16xf32>, vector<8x16xf32>, vector<8x16xf32>, vector<8x16xf32>, vector<8x16xf32>, vector<8x16xf32>, vector<8x16xf32>, vector<8x16xf32>, vector<8x16xf32>, vector<8x16xf32>, vector<8x16xf32> -> vector<8x256xf32>
    %424 = arith.truncf %423 : vector<8x256xf32> to vector<8x256xbf16>
    %c0_53 = arith.constant 0 : index
    %c0_54 = arith.constant 0 : index
    %c0_55 = arith.constant 0 : index
    %425 = vector.load %arg5[%c0_53, %c0_54, %c0_55] : memref<1x8x256xbf16, #tpu.memory_space<vmem>>, vector<1x8x256xbf16>
    %426 = vector.shape_cast %425 : vector<1x8x256xbf16> to vector<8x256xbf16>
    %427 = vector.shape_cast %424 : vector<8x256xbf16> to vector<1x8x256xbf16>
    tpu.vector_store %arg5[%c0_53, %c0_54, %c0_55], %427 {strides = array<i32>} : memref<1x8x256xbf16, #tpu.memory_space<vmem>>, vector<1x8x256xbf16>,
    return
  }
  func.func @transform_0(%arg0: i32, %arg1: i32) -> (i32, i32, i32, i32) {
    %c0_i32 = arith.constant 0 : i32
    %c0_i32_0 = arith.constant 0 : i32
    %c0_i32_1 = arith.constant 0 : i32
    %c0_i32_2 = arith.constant 0 : i32
    return %arg0, %c0_i32, %c0_i32_0, %c0_i32_1 : i32, i32, i32, i32
  }
  func.func @transform_1(%arg0: i32, %arg1: i32) -> (i32, i32) {
    %c0_i32 = arith.constant 0 : i32
    %c0_i32_0 = arith.constant 0 : i32
    %c0_i32_1 = arith.constant 0 : i32
    return %c0_i32, %c0_i32_0 : i32, i32
  }
  func.func @transform_2(%arg0: i32, %arg1: i32) -> (i32, i32) {
    %c0_i32 = arith.constant 0 : i32
    %c0_i32_0 = arith.constant 0 : i32
    %c0_i32_1 = arith.constant 0 : i32
    return %c0_i32, %c0_i32_0 : i32, i32
  }
  func.func @transform_3(%arg0: i32, %arg1: i32) -> (i32, i32, i32) {
    %c0_i32 = arith.constant 0 : i32
    %c0_i32_0 = arith.constant 0 : i32
    return %arg0, %c0_i32, %arg1 : i32, i32, i32
  }
}

</mosaic_0001>

<bundles_post_ra>
// kernel: tpu_custom_call.1
= control target key start
LH: loop header
LB: loop body
LE: loop exit
PB: predicated region body
PF: predicated region fallthrough
CT: control target
= control target key end

     0   :  { %8 = vsyncpa [#allocation3], 0  ;;  %s3502_s0 = inlined_call_operand.vmem [shape: bf16[2,4,18,18], index: 0, kind: input, shape index: {}]   ;;  %s3503_s1 = inlined_call_operand.vmem [shape: bf16[8,36], index: 1, kind: input, shape index: {}]   ;;  %s3504_s2 = inlined_call_operand.vmem [shape: f32[8,1], index: 2, kind: input, shape index: {}]   ;;  %s3505_s3 = inlined_call_operand.hbm [shape: bf16[2,8,256], index: 3, kind: output, shape index: {}]  }
   0x1   :  { %10 = vsyncpa [#allocation3 + $0x1], 0  ;;  %s2277_s12 = smov 0   ;;  %s2279_s13 = smov 0  }
   0x2   :  { %s2281_s14 = smov 0   ;;  %s2283_s15 = smov 0  }
   0x3   :  { %s2285_s16 = smov 0   ;;  %s2287_s17 = smov 0  }
   0x4 LB: > { %s1780_s18 = sadd.s32 4294967295, %s2242_s17   ;;  %s1781_s19 = sadd.s32 4294967294, %s2242_s17   ;;  %s2242_s17 = sphi %s2287_s17, %s16_s17   ;;  %s2238_s16 = sphi %s2285_s16, %s3548_s16   ;;  %s2234_s15 = sphi %s2283_s15, %s3547_s15   ;;  %s2230_s14 = sphi %s2281_s14, %s3546_s14   ;;  %s2226_s13 = sphi %s2279_s13, %s3545_s13   ;;  %s2222_s12 = sphi %s2277_s12, %s3544_s12  }
   0x5   : > { %s28_s20 = sadd.s32 1, %s2238_s16  ;;  %s105_s21 = sadd.s32 1, %s2230_s14 }
   0x6   : > { %p30_p0 = scmp.ge.s32.totalorder %s28_s20, 2  ;;  %p115_p1 = scmp.ne.s32.totalorder %s2230_s14, %s2226_s13 }
   0x7   : > { %p116_p2 = scmp.eq.s32.totalorder %s1780_s18, 1  ;;  %p121_p3 = scmp.ne.s32.totalorder %s2226_s13, %s2222_s12 }
   0x8   : > { %s3550_s20 = smov (%p30_p0, %s28_s20), 0  ;;  %p122_p5 = scmp.eq.s32.totalorder %s1781_s19, 1 }
   0x9   : > { %p2317_p4 = por %p116_p2, %p115_p1  ;;  %s100_s23 = ssub.s32 %s2238_s16, %s3550_s20 }
   0xa   : > { %p1784_p6 = scmp.ge.s32.totalorder %s2242_s17, 1  ;;  %p103_p7 = scmp.eq.s32.totalorder %s100_s23, 0 }
   0xb   : > { %p2324_p8 = por %p122_p5, %p121_p3  ;;  %p154_p9 = scmp.lt.s32.totalorder %s2242_s17, 3 }
   0xc   : > { %s2330_s25 = scalar_select %p103_p7, %s2230_s14, %s105_s21  }
   0xd   : > { %p155_p10 = pnand %p1784_p6, %p154_p9 }
   0xe   : > { %p178_p11 = scmp.lt.s32.totalorder (!%p155_p10), %s2234_s15, 1  ;;  %vm232_vm0 = vcmask (!%p155_p10), 1045509   ;;  %vm235_vm1 = vcmask (!%p155_p10), 1046534   ;;  %vm238_vm2 = vcmask (!%p155_p10), 1047559   ;;  %vm221_vm3 = vcmask (!%p155_p10), 1041409   ;;  %s2244_s4 = smov (!%p155_p10), 127  }
   0xf   : > { %158 = sbr.rel (%p155_p10) target bundleno = 650 (0x28a), region = 32  ;;  %vm224_vm4 = vcmask (!%p155_p10), 1042434   ;;  %vm227_vm5 = vcmask (!%p155_p10), 1043459   ;;  %s2245_s5 = smov (!%p155_p10), 126   ;;  %vm2247_vm6 = vmmov (!%p155_p10), 0   ;;  %vm294_vm7 = vcmask (!%p155_p10), 1041408  }
  0x10   : > { %vm298_vm8 = vcmask (!%p155_p10), 1043456   ;;  %vm301_vm9 = vcmask (!%p155_p10), 1045504   ;;  %vm318_vm10 = vcmask (!%p155_p10), 293888   ;;  %s2249_s10 = smov (!%p155_p10), 16   ;;  %s2250_s11 = smov (!%p155_p10), 48   ;;  %vm1661_vm11 = vcmask (!%p155_p10), 130048  }
  0x11   : > { %s2251_s18 = smov (!%p155_p10), 32   ;;  %s2252_s19 = smov (!%p155_p10), 64   ;;  %vm1663_vm12 = vcmask (!%p155_p10), 261120   ;;  %vm1665_vm13 = vcmask (!%p155_p10), 392192   ;;  %vm1667_vm14 = vcmask (!%p155_p10), 523264   ;;  %vm1669_vm15 = vcmask (!%p155_p10), 654336  }
  0x12   : > { %s2253_s21 = smov (!%p155_p10), 80   ;;  %s2254_s23 = smov (!%p155_p10), 96  }
  0x13   : > { %s1822_s29 = sshll.u32 (!%p155_p10), %s2234_s15, 7  ;;  %s2256_s9 = smov (!%p155_p10), [#allocation2]  }
  0x14   : > { %s3453_s7 = scalar_lea.hbm (!%p155_p10), %s3505_s3, %s1822_s29 }
  0x16   : > { %s179_s26 = scalar_select %p178_p11, %s2234_s15, 1 }
  0x18   : > { %s2047_s27 = smul.u32 48, %s179_s26  ;;  %s2255_s26 = smov 112  }
  0x1a   : > { %s2337_s30 = scalar_lea.vmem %s3502_s0, %s2047_s27  ;;  %s175_s27 = sand.u32 1, %s2226_s13  }
  0x1b   : > { %v2340_v0 = vld [vmem:[%s2337_s30] ss:$0 sps:$4 sm:$0xff]   ;;  %v2153_v1 = vld [vmem:[%s2337_s30 + $0xc] ss:$0 sps:$4 sm:$0xff]   ;;  %v2154_v2 = vld [vmem:[%s2337_s30 + $0x18] ss:$0 sps:$4 sm:$0xff]  }
  0x1c   : > { %v2155_v3 = vld [vmem:[%s2337_s30 + $0x24] ss:$0 sps:$4 sm:$0xff]   ;;  %v2346_v4 = vunpack.c.l.b16 %v2340_v0  ;;  %v2348_v5 = vunpack.c.l.b16 %v2153_v1  ;;  %v243_v6 = vunpack.c.h.b16 %v2340_v0  ;;  %v244_v7 = vunpack.c.h.b16 %v2153_v1  ;;  %s3444_s28 = sshll.u32 %s175_s27, 3  ;;  %s1692_s15 = scalar_lea.sflag [#allocation3], %s175_s27 }
  0x1d   : > { %v2351_v8 = vunpack.c.l.b16 %v2154_v2  ;;  %v2353_v9 = vunpack.c.l.b16 %v2155_v3  ;;  %v245_v10 = vunpack.c.h.b16 %v2154_v2  ;;  %v246_v11 = vunpack.c.h.b16 %v2155_v3 }
  0x1e   : > { %v256_v12 = vrot.slane %v2346_v4, 5  ;;  %v257_v13 = vrot.slane %v2348_v5, 4  ;;  %v230_v14 = vrot.slane %v2346_v4, 4  ;;  %v231_v15 = vrot.slane %v2348_v5, 3 }
  0x1f   : > { %v259_v16 = vrot.slane %v2351_v8, 3  ;;  %v261_v17 = vrot.slane %v2353_v9, 2  ;;  %v234_v18 = vrot.slane %v2351_v8, 2  ;;  %v237_v19 = vrot.slane %v2353_v9, 1 }
  0x20   : > { %v258_v20 = vsel %vm232_vm0, %v257_v13, %v256_v12  ;;  %v233_v21 = vsel %vm232_vm0, %v231_v15, %v230_v14  ;;  %v264_v22 = vrot.slane %v2346_v4, 1  ;;  %v266_v23 = vrot.slane %v2351_v8, 7 }
  0x21   : > { %v260_v24 = vsel %vm235_vm1, %v259_v16, %v258_v20  ;;  %v236_v25 = vsel %vm235_vm1, %v234_v18, %v233_v21  ;;  %v268_v26 = vrot.slane %v2353_v9, 6  ;;  %v2382_v27 = vrot.slane %v244_v7, 7 }
  0x22   : > { %v262_v28 = vsel %vm238_vm2, %v261_v17, %v260_v24  ;;  %v239_v29 = vsel %vm238_vm2, %v237_v19, %v236_v25  ;;  %v265_v30 = vsel %vm221_vm3, %v2348_v5, %v264_v22  ;;  %v2394_v31 = vrot.slane %v245_v10, 6  ;;  %v2493_v24 = vld [vmem:[%s2337_s30 + $0x4] ss:$0 sps:$4 sm:$0xff]  }
  0x23   : > { %v2396_v32 = vpack.c.b16 %v262_v28, %v262_v28  ;;  %v240_v33 = vpack.c.b16 %v239_v29, %v239_v29  ;;  %v267_v34 = vsel %vm224_vm4, %v266_v23, %v265_v30  ;;  %v248_v35 = vsel %vm221_vm3, %v2382_v27, %v243_v6  ;;  %v2502_v29 = vld [vmem:[%s2337_s30 + $0x10] ss:$0 sps:$4 sm:$0xff]  }
  0x24   : > { %v269_v36 = vsel %vm227_vm5, %v268_v26, %v267_v34  ;;  %v250_v37 = vsel %vm224_vm4, %v2394_v31, %v248_v35  ;;  %v2410_v38 = vrot.slane %v246_v11, 5  ;;  %v282_v39 = vrot.slane %v2346_v4, 6  ;;  %v2513_v34 = vld [vmem:[%s2337_s30 + $0x28] ss:$0 sps:$4 sm:$0xff]  }
  0x25   : > { %367 = vrot.lane.b32.xlu1 %v2396_v32, %s2244_s4  ;;  %241 = vrot.lane.b32.xlu0 %v240_v33, %s2244_s4  ;;  %v2416_v40 = vpack.c.b16 %v269_v36, %v269_v36  ;;  %v283_v41 = vrot.slane %v2348_v5, 5  ;;  %v285_v42 = vrot.slane %v2351_v8, 4  ;;  %v287_v43 = vrot.slane %v2353_v9, 3  ;;  %v2510_v33 = vld [vmem:[%s2337_s30 + $0x1c] ss:$0 sps:$4 sm:$0xff]  }
  0x26   : > { %v252_v44 = vsel %vm227_vm5, %v2410_v38, %v250_v37  ;;  %v275_v45 = vrot.slane %v2346_v4, 2  ;;  %v276_v46 = vrot.slane %v2348_v5, 1  ;;  %v279_v47 = vrot.slane %v2353_v9, 7 }
  0x27   : > { %v253_v48 = vpack.c.b16 %v252_v44, %v252_v44  ;;  %v284_v49 = vsel %vm232_vm0, %v283_v41, %v282_v39  ;;  %v382_v50 = vrot.slane %v2346_v4, 7  ;;  %v383_v51 = vrot.slane %v2348_v5, 6 }
  0x28   : > { %v286_v52 = vsel %vm235_vm1, %v285_v42, %v284_v49  ;;  %v277_v53 = vsel %vm221_vm3, %v276_v46, %v275_v45  ;;  %v385_v54 = vrot.slane %v2351_v8, 5  ;;  %v375_v57 = vrot.slane %v2346_v4, 3 }
  0x29   : > { %369 = vrot.lane.b32.xlu1 %v2416_v40, %s2245_s5  ;;  %254 = vrot.lane.b32.xlu0 %v253_v48, %s2245_s5  ;;  %v278_v55 = vsel %vm224_vm4, %v2351_v8, %v277_v53  ;;  %v384_v56 = vsel %vm232_vm0, %v383_v51, %v382_v50  ;;  %v288_v58 = vsel %vm238_vm2, %v287_v43, %v286_v52  ;;  %v387_v60 = vrot.slane %v2353_v9, 4 }
  0x2a   : > { %v280_v59 = vsel %vm227_vm5, %v279_v47, %v278_v55  ;;  %v376_v61 = vrot.slane %v2348_v5, 2  ;;  %v386_v62 = vsel %vm235_vm1, %v385_v54, %v384_v56  ;;  %v378_v63 = vrot.slane %v2351_v8, 1 }
  0x2b   : > { %v2474_v2 = vpack.c.b16 %v288_v58, %v288_v58  ;;  %v2476_v3 = vpack.c.b16 %v280_v59, %v280_v59  ;;  %v388_v7 = vsel %vm238_vm2, %v387_v60, %v386_v62  ;;  %v220_v10 = vrot.slane %v2348_v5, 7 }
  0x2c   : > { %v377_v1 = vsel %vm221_vm3, %v376_v61, %v375_v57  ;;  %v2489_v20 = vpack.c.b16 %v388_v7, %v388_v7  ;;  %v223_v21 = vrot.slane %v2351_v8, 6  ;;  %v459_v30 = vsel %vm221_vm3, %v231_v15, %v230_v14 }
  0x2d   : > { %273 = vrot.lane.b32.xlu1 %v2396_v32, %s2245_s5  ;;  %271 = vrot.lane.b32.xlu0 %v2416_v40, %s2244_s4  ;;  %v379_v11 = vsel %vm224_vm4, %v378_v63, %v377_v1  ;;  %v531_v28 = vsel %vm232_vm0, %v220_v10, %v2346_v4  ;;  %v226_v35 = vrot.slane %v2353_v9, 5  ;;  %v2526_v14 = vunpack.c.l.b16 %v2493_v24 }
  0x2e   : > { %v380_v25 = vsel %vm227_vm5, %v2353_v9, %v379_v11  ;;  %v532_v37 = vsel %vm235_vm1, %v223_v21, %v531_v28  ;;  %v460_v15 = vsel %vm224_vm4, %v234_v18, %v459_v30  ;;  %v541_v44 = vsel %vm232_vm0, %v2348_v5, %v264_v22 }
  0x2f   : > { %v2520_v36 = vpack.c.b16 %v380_v25, %v380_v25  ;;  %v2536_v48 = vunpack.c.l.b16 %v2502_v29  ;;  %v463_v49 = vsel %vm232_vm0, %v2382_v27, %v243_v6  ;;  %v2543_v52 = vunpack.c.l.b16 %v2510_v33 }
  0x30   : > { %v2546_v53 = vunpack.c.l.b16 %v2513_v34  ;;  %v3521_v18 = vrot.slane %v2526_v14, 4  ;;  %v533_v22 = vsel %vm238_vm2, %v226_v35, %v532_v37  ;;  %v461_v0 = vsel %vm227_vm5, %v237_v19, %v460_v15 }
  0x31   : > { %373 = vrot.lane.b32.xlu1 %v2474_v2, %s2245_s5  ;;  %371 = vrot.lane.b32.xlu0 %v2476_v3, %s2244_s4  ;;  %v3520_v55 = vrot.slane %v2536_v48, 3  ;;  %v542_v6 = vsel %vm235_vm1, %v266_v23, %v541_v44  ;;  %v3519_v27 = vrot.slane %v2543_v52, 2  ;;  %v464_v58 = vsel %vm235_vm1, %v2394_v31, %v463_v49 }
  0x32   : > { %v3518_v56 = vrot.slane %v2546_v53, 1  ;;  %v3517_v62 = vrot.slane %v2526_v14, 5  ;;  %v3516_v19 = vrot.slane %v2536_v48, 4  ;;  %v537_v23 = vsel %vm221_vm3, %v257_v13, %v256_v12 }
  0x33   : > { %v791_v59 = vsel %vm232_vm0, %v3520_v55, %v3521_v18  ;;  %v3515_v1 = vrot.slane %v2543_v52, 3  ;;  %v3514_v7 = vrot.slane %v2546_v53, 2  ;;  %v2584_v11 = vpack.c.b16 %v533_v22, %v533_v22 }
  0x34   : > { %v793_v31 = vsel %vm235_vm1, %v3519_v27, %v791_v59  ;;  %v879_v12 = vsel %vm232_vm0, %v3516_v19, %v3517_v62  ;;  %v2600_v13 = vpack.c.b16 %v461_v0, %v461_v0  ;;  %v543_v28 = vsel %vm238_vm2, %v268_v26, %v542_v6 }
  0x35   : > { %390 = vrot.lane.b32.xlu1 %v2489_v20, %s2244_s4  ;;  %290 = vrot.lane.b32.xlu0 %v2474_v2, %s2244_s4  ;;  %v2589_v25 = vsel %vm238_vm2, %v3518_v56, %v793_v31  ;;  %v881_v30 = vsel %vm235_vm1, %v3515_v1, %v879_v12  ;;  %v465_v37 = vsel %vm238_vm2, %v2410_v38, %v464_v58  ;;  %v3513_v22 = vrot.slane %v2526_v14, 6 }
  0x36   : > { %v538_v15 = vsel %vm224_vm4, %v259_v16, %v537_v23  ;;  %v2616_v44 = vsel %vm238_vm2, %v3514_v7, %v881_v30  ;;  %v2618_v49 = vpack.c.b16 %v543_v28, %v543_v28  ;;  %v613_v26 = vsel %vm221_vm3, %v283_v41, %v282_v39 }
  0x37   : > { %v3512_v38 = vrot.slane %v2536_v48, 5  ;;  %v2631_v16 = vpack.c.b16 %v465_v37, %v465_v37  ;;  %v539_v0 = vsel %vm227_vm5, %v261_v17, %v538_v15  ;;  %v3511_v6 = vrot.slane %v2543_v52, 4 }
  0x38   : > { %v3506_v39 = vrot.slane %v2546_v53, 3  ;;  %v614_v58 = vsel %vm224_vm4, %v285_v42, %v613_v26  ;;  %v2649_v23 = vpack.c.b16 %v539_v0, %v539_v0  ;;  %v3510_v31 = vrot.slane %v2526_v14, 7 }
  0x39   : > { %392 = vrot.lane.b32.xlu1 %v2520_v36, %s2245_s5  ;;  %292 = vrot.lane.b32.xlu0 %v2476_v3, %s2245_s5  ;;  %v962_v41 = vsel %vm232_vm0, %v3512_v38, %v3513_v22  ;;  %v3507_v12 = vrot.slane %v2536_v48, 6  ;;  %v799_v42 = vrot.slane %v2536_v48, 7  ;;  %v775_v28 = vunpack.c.h.b16 %v2502_v29  ;;  %v2766_v22 = vld [vmem:[%s2337_s30 + $0x8] ss:$0 sps:$4 sm:$0x11]  }
  0x3a   : > { %v964_v59 = vsel %vm235_vm1, %v3511_v6, %v962_v41  ;;  %v3509_v30 = vrot.slane %v2543_v52, 5  ;;  %v3508_v37 = vrot.slane %v2546_v53, 4  ;;  %v617_v15 = vsel %vm232_vm0, %v276_v46, %v275_v45 }
  0x3b   : > { %v2654_v17 = vsel %vm238_vm2, %v3506_v39, %v964_v59  ;;  %v801_v26 = vrot.slane %v2543_v52, 6  ;;  %v776_v0 = vunpack.c.h.b16 %v2510_v33  ;;  %v1045_v29 = vsel %vm232_vm0, %v3507_v12, %v3510_v31 }
  0x3c   : > { %v803_v41 = vrot.slane %v2546_v53, 5  ;;  %v777_v59 = vunpack.c.h.b16 %v2513_v34  ;;  %v1047_v39 = vsel %vm235_vm1, %v3509_v30, %v1045_v29  ;;  %v1189_v45 = vsel %vm232_vm0, %v799_v42, %v2526_v14 }
  0x3d   : > { %457 = vrot.lane.b32.xlu1 %v2489_v20, %s2245_s5  ;;  %455 = vrot.lane.b32.xlu0 %v2520_v36, %s2244_s4  ;;  %v615_v46 = vsel %vm227_vm5, %v287_v43, %v614_v58  ;;  %v870_v33 = vrot.slane %v2526_v14, 1  ;;  %v2694_v12 = vsel %vm238_vm2, %v3508_v37, %v1047_v39  ;;  %v1190_v34 = vsel %vm235_vm1, %v801_v26, %v1189_v45 }
  0x3e   : > { %v774_v29 = vunpack.c.h.b16 %v2493_v24  ;;  %v2704_v43 = vrot.slane %v775_v28, 7  ;;  %v872_v58 = vrot.slane %v2543_v52, 7  ;;  %v2710_v39 = vsel %vm238_vm2, %v803_v41, %v1190_v34 }
  0x3f   : > { %v618_v45 = vsel %vm235_vm1, %v2351_v8, %v617_v15  ;;  %v2714_v37 = vrot.slane %v776_v0, 6  ;;  %v874_v30 = vrot.slane %v2546_v53, 6  ;;  %v1199_v28 = vsel %vm232_vm0, %v2536_v48, %v870_v33 }
  0x40   : > { %v692_v31 = vsel %vm232_vm0, %v376_v61, %v375_v57  ;;  %v2726_v34 = vrot.slane %v777_v59, 5  ;;  %v1200_v15 = vsel %vm235_vm1, %v872_v58, %v1199_v28  ;;  %v1121_v0 = vsel %vm232_vm0, %v2704_v43, %v774_v29 }
  0x41   : > { %535 = vrot.lane.b32.xlu1 %v2584_v11, %s2245_s5  ;;  %529 = vrot.lane.b32.xlu0 %v2600_v13, %s2244_s4  ;;  %v2735_v6 = vpack.c.b16 %v615_v46, %v615_v46  ;;  %v2740_v38 = vsel %vm238_vm2, %v874_v30, %v1200_v15  ;;  %v1122_v57 = vsel %vm235_vm1, %v2714_v37, %v1121_v0  ;;  %v953_v61 = vrot.slane %v2526_v14, 2 }
  0x42   : > { %v954_v59 = vrot.slane %v2536_v48, 1  ;;  %v2752_v46 = vsel %vm238_vm2, %v2726_v34, %v1122_v57  ;;  %v619_v28 = vsel %vm238_vm2, %v279_v47, %v618_v45  ;;  %v693_v15 = vsel %vm235_vm1, %v378_v63, %v692_v31  ;;  %v2769_v57 = vld [vmem:[%s2337_s30 + $0x14] ss:$0 sps:$4 sm:$0x11]  }
  0x43   : > { %v2246_v0 = vmov 0.0   ;;  %v688_v47 = vsel %vm221_vm3, %v383_v51, %v382_v50  ;;  %v957_v63 = vrot.slane %v2546_v53, 7  ;;  %v2787_v45 = vld [vmem:[%s2337_s30 + $0x20] ss:$0 sps:$4 sm:$0x11]   ;;  %v3523_v5 = vrot.slane %v2536_v48, 2 }
  0x44   : > { %1887 = vmatprep.subr.bf16.mxu0 %v2246_v0  ;;  %1897 = vmatprep.subr.bf16.mxu1 %v2246_v0  ;;  %v3522_v7 = vrot.slane %v2543_v52, 1  ;;  %v2821_v1 = vunpack.c.l.b16 %v2766_v22  ;;  %v2834_v19 = vunpack.c.l.b16 %v2769_v57  ;;  %v2841_v8 = vunpack.c.l.b16 %v2787_v45 }
  0x45   : > { %545 = vrot.lane.b32.xlu1 %v2618_v49, %s2244_s4  ;;  %467 = vrot.lane.b32.xlu0 %v2631_v16, %s2244_s4 }
  0x46   : > { %v1450_v56 = vrot.slane %v2841_v8, 2  ;;  %v1535_v18 = vrot.slane %v2821_v1, 5  ;;  %1893 = vmatprep.mubr.msk.bf16.mxu0 %vm2247_vm6, %v2246_v0  ;;  %1903 = vmatprep.mubr.msk.bf16.mxu1 %vm2247_vm6, %v2246_v0 }
  0x49   : > { %547 = vrot.lane.b32.xlu1 %v2649_v23, %s2245_s5  ;;  %469 = vrot.lane.b32.xlu0 %v2600_v13, %s2245_s5 }
  0x4d   : > { %609 = vrot.lane.b32.xlu1 %v2649_v23, %s2244_s4  ;;  %607 = vrot.lane.b32.xlu0 %v2584_v11, %s2244_s4  ;;  %v222_v11 = vsel %vm221_vm3, %v220_v10, %v2346_v4  ;;  %v1275_v10 = vsel %vm232_vm0, %v954_v59, %v953_v61  ;;  %v1036_v4 = vrot.slane %v2526_v14, 3 }
  0x4e   : > { %v225_v31 = vsel %vm224_vm4, %v223_v21, %v222_v11  ;;  %v1276_v51 = vsel %vm235_vm1, %v2543_v52, %v1275_v10  ;;  %v2799_v21 = vld [vmem:[%s2337_s30 + $0x2c] ss:$0 sps:$4 sm:$0x11]   ;;  %v2805_v11 = vpack.c.b16 %v619_v28, %v619_v28  ;;  %v689_v28 = vsel %vm224_vm4, %v385_v54, %v688_v47  ;;  %s177_s30 = scalar_lea.vmem [#allocation2], %s3444_s28 }
  0x4f   : > { %v2794_v50 = vsel %vm227_vm5, %v226_v35, %v225_v31  ;;  %v2811_v35 = vsel %vm238_vm2, %v957_v63, %v1276_v51  ;;  %v694_v31 = vsel %vm238_vm2, %v2353_v9, %v693_v15  ;;  %v1350_v10 = vsel %vm232_vm0, %v3523_v5, %v1036_v4 }
  0x50   : > { %v800_v51 = vsel %vm221_vm3, %v799_v42, %v2526_v14  ;;  %v1351_v15 = vsel %vm235_vm1, %v3522_v7, %v1350_v10  ;;  %v2844_v54 = vunpack.c.l.b16 %v2799_v21  ;;  %v1447_v47 = vrot.slane %v2821_v1, 4 }
  0x51   : > { %684 = vrot.lane.b32.xlu1 %v2735_v6, %s2244_s4  ;;  %611 = vrot.lane.b32.xlu0 %v2618_v49, %s2245_s5  ;;  %v2838_v62 = vsel %vm238_vm2, %v2546_v53, %v1351_v15  ;;  %v2851_v42 = vpack.c.b16 %v694_v31, %v694_v31  ;;  %v690_v10 = vsel %vm227_vm5, %v387_v60, %v689_v28  ;;  %v1448_v15 = vrot.slane %v2834_v19, 3 }
  0x52   : > { %v1452_v27 = vrot.slane %v2844_v54, 1  ;;  %v802_v55 = vsel %vm224_vm4, %v801_v26, %v800_v51  ;;  %v1536_v7 = vrot.slane %v2834_v19, 4  ;;  %v1538_v31 = vrot.slane %v2841_v8, 3 }
  0x53   : > { %v1449_v9 = vsel %vm232_vm0, %v1448_v15, %v1447_v47  ;;  %v1540_v60 = vrot.slane %v2844_v54, 2  ;;  %v2871_v28 = vpack.c.b16 %v690_v10, %v690_v10  ;;  %v804_v5 = vsel %vm227_vm5, %v803_v41, %v802_v55 }
  0x54   : > { %v1451_v26 = vsel %vm235_vm1, %v1450_v56, %v1449_v9  ;;  %v1537_v51 = vsel %vm232_vm0, %v1536_v7, %v1535_v18  ;;  %v2893_v18 = vpack.c.b16 %v804_v5, %v804_v5  ;;  %v779_v55 = vsel %vm221_vm3, %v2704_v43, %v774_v29 }
  0x55   : > { %621 = vrot.lane.b32.xlu1 %v2805_v11, %s2244_s4  ;;  %686 = vrot.lane.b32.xlu0 %v2805_v11, %s2245_s5  ;;  %v2879_v47 = vsel %vm238_vm2, %v1452_v27, %v1451_v26  ;;  %v1539_v15 = vsel %vm235_vm1, %v1538_v31, %v1537_v51  ;;  %v871_v27 = vsel %vm221_vm3, %v2536_v48, %v870_v33  ;;  %v3528_v31 = vrot.slane %v2526_v14, 4 }
  0x56   : > { %v2887_v56 = vsel %vm238_vm2, %v1540_v60, %v1539_v15  ;;  %v2909_v7 = vpack.c.b16 %v2589_v25, %v2589_v25  ;;  %v781_v24 = vsel %vm224_vm4, %v2714_v37, %v779_v55  ;;  %v873_v41 = vsel %vm224_vm4, %v872_v58, %v871_v27 }
  0x57   : > { %v2922_v33 = vpack.c.b16 %v2616_v44, %v2616_v44  ;;  %v783_v25 = vsel %vm227_vm5, %v2726_v34, %v781_v24  ;;  %v875_v37 = vsel %vm227_vm5, %v874_v30, %v873_v41  ;;  %v955_v29 = vsel %vm221_vm3, %v954_v59, %v953_v61 }
  0x58   : > { %v2938_v44 = vpack.c.b16 %v783_v25, %v783_v25  ;;  %v2940_v43 = vpack.c.b16 %v875_v37, %v875_v37  ;;  %v956_v58 = vsel %vm224_vm4, %v2543_v52, %v955_v29  ;;  %v3526_v34 = vrot.slane %v2536_v48, 2 }
  0x59   : > { %623 = vrot.lane.b32.xlu1 %v2735_v6, %s2245_s5  ;;  %696 = vrot.lane.b32.xlu0 %v2851_v42, %s2244_s4  ;;  %v958_v30 = vsel %vm227_vm5, %v957_v63, %v956_v58  ;;  %v2962_v59 = vpack.c.b16 %v2654_v17, %v2654_v17  ;;  %v3527_v63 = vrot.slane %v2543_v52, 1  ;;  %v3529_v9 = vrot.slane %v2536_v48, 3 }
  0x5a   : > { %v1038_v61 = vsel %vm221_vm3, %v3526_v34, %v1036_v4  ;;  %v2964_v5 = vpack.c.b16 %v958_v30, %v958_v30  ;;  %v2975_v4 = vpack.c.b16 %v2694_v12, %v2694_v12  ;;  %v3530_v12 = vrot.slane %v2543_v52, 2 }
  0x5b   : > { %v1040_v10 = vsel %vm224_vm4, %v3527_v63, %v1038_v61  ;;  %v1117_v60 = vsel %vm221_vm3, %v3529_v9, %v3528_v31  ;;  %v3531_v15 = vrot.slane %v2546_v53, 1  ;;  %v3532_v27 = vrot.slane %v2526_v14, 5 }
  0x5c   : > { %v1041_v17 = vsel %vm227_vm5, %v2546_v53, %v1040_v10  ;;  %v1118_v51 = vsel %vm224_vm4, %v3530_v12, %v1117_v60  ;;  %v3533_v24 = vrot.slane %v2536_v48, 4  ;;  %v1192_v25 = vpack.c.b16 %v2710_v39, %v2710_v39 }
  0x5d   : > { %758 = vrot.lane.b32.xlu1 %v2871_v28, %s2244_s4  ;;  %698 = vrot.lane.b32.xlu0 %v2871_v28, %s2245_s5  ;;  %v2988_v26 = vpack.c.b16 %v1041_v17, %v1041_v17  ;;  %v1119_v55 = vsel %vm227_vm5, %v3531_v15, %v1118_v51  ;;  %v3534_v29 = vrot.slane %v2543_v52, 3  ;;  %v3021_v30 = vpack.c.b16 %v2740_v38, %v2740_v38 }
  0x5e   : > { %v1195_v41 = vsel %vm221_vm3, %v3533_v24, %v3532_v27  ;;  %v3011_v37 = vpack.c.b16 %v1119_v55, %v1119_v55  ;;  %v3025_v34 = vpack.c.b16 %v2752_v46, %v2752_v46  ;;  %v3535_v39 = vrot.slane %v2546_v53, 2 }
  0x5f   : > { %v1196_v58 = vsel %vm224_vm4, %v3534_v29, %v1195_v41  ;;  %v3536_v63 = vrot.slane %v2526_v14, 6  ;;  %v3537_v10 = vrot.slane %v2536_v48, 5  ;;  %v3538_v46 = vrot.slane %v2543_v52, 4 }
  0x60   : > { %v1197_v61 = vsel %vm227_vm5, %v3535_v39, %v1196_v58  ;;  %v3539_v9 = vrot.slane %v2546_v53, 3  ;;  %v1433_v51 = vunpack.c.h.b16 %v2769_v57  ;;  %v3540_v15 = vrot.slane %v2526_v14, 7 }
  0x61   : > { %866 = vrot.lane.b32.xlu1 %v2893_v18, %s2244_s4  ;;  %760 = vrot.lane.b32.xlu0 %v2851_v42, %s2245_s5  ;;  %v1271_v17 = vsel %vm221_vm3, %v3537_v10, %v3536_v63  ;;  %v3039_v38 = vpack.c.b16 %v1197_v61, %v1197_v61  ;;  %v3541_v55 = vrot.slane %v2536_v48, 6  ;;  %v1434_v24 = vunpack.c.h.b16 %v2787_v45 }
  0x62   : > { %v1272_v31 = vsel %vm224_vm4, %v3538_v46, %v1271_v17  ;;  %v1457_v41 = vrot.slane %v2834_v19, 7  ;;  %v1432_v29 = vunpack.c.h.b16 %v2766_v22  ;;  %v1435_v58 = vunpack.c.h.b16 %v2799_v21 }
  0x63   : > { %v1273_v60 = vsel %vm227_vm5, %v3539_v9, %v1272_v31  ;;  %v1346_v27 = vsel %vm221_vm3, %v3541_v55, %v3540_v15  ;;  %v1436_v39 = vrot.slane %v1433_v51, 7  ;;  %v3072_v14 = vpack.c.b16 %v2811_v35, %v2811_v35 }
  0x64   : > { %v3054_v12 = vpack.c.b16 %v1273_v60, %v1273_v60  ;;  %v1438_v48 = vrot.slane %v1434_v24, 6  ;;  %v1440_v45 = vrot.slane %v1435_v58, 5  ;;  %v229_v22 = vpack.c.b16 %v2794_v50, %v2794_v50 }
  0x65   : > { %797 = vrot.lane.b32.xlu1 %v2909_v7, %s2244_s4  ;;  %868 = vrot.lane.b32.xlu0 %v2909_v7, %s2245_s5  ;;  %v1437_v57 = vsel %vm221_vm3, %v1436_v39, %v1432_v29  ;;  %v3542_v21 = vrot.slane %v2543_v52, 5  ;;  %v1459_v10 = vrot.slane %v2841_v8, 6  ;;  %v1458_v35 = vsel %vm221_vm3, %v1457_v41, %v2821_v1 }
  0x66   : > { %v1439_v17 = vsel %vm224_vm4, %v1438_v48, %v1437_v57  ;;  %v3095_v52 = vpack.c.b16 %v2838_v62, %v2838_v62  ;;  %v3543_v50 = vrot.slane %v2546_v53, 4  ;;  %v1461_v60 = vrot.slane %v2844_v54, 5 }
  0x67   : > { %v1347_v63 = vsel %vm224_vm4, %v3542_v21, %v1346_v27  ;;  %v3085_v46 = vsel %vm227_vm5, %v1440_v45, %v1439_v17  ;;  %v1460_v55 = vsel %vm224_vm4, %v1459_v10, %v1458_v35  ;;  %v1528_v48 = vrot.slane %v2821_v1, 1 }
  0x68   : > { %v1348_v9 = vsel %vm227_vm5, %v3543_v50, %v1347_v63  ;;  %v1462_v29 = vsel %vm227_vm5, %v1461_v60, %v1460_v55  ;;  %v1530_v45 = vrot.slane %v2841_v8, 7  ;;  %v3133_v1 = vpack.c.b16 %v2879_v47, %v2879_v47 }
  0x69   : > { %806 = vrot.lane.b32.xlu1 %v2893_v18, %s2245_s5  ;;  %885 = vrot.lane.b32.xlu0 %v2922_v33, %s2244_s4  ;;  %v3113_v41 = vpack.c.b16 %v1348_v9, %v1348_v9  ;;  %v1532_v21 = vrot.slane %v2844_v54, 6  ;;  %v2248_v63 = vmov 0   ;;  %v1542_v54 = vpack.c.b16 %v2887_v56, %v2887_v56 }
  0x6a   : > { %2115 = vset.pattern.permute.xlu1 %v2248_v63  ;;  %2151 = vset.pattern.permute.xlu0 %v2248_v63  ;;  %vm1671_vm0 = vcmask 785408   ;;  %vm1673_vm1 = vcmask 916480  }
  0x6d   : > { %947 = vrot.lane.b32.xlu1 %v2938_v44, %s2245_s5  ;;  %887 = vrot.lane.b32.xlu0 %v2940_v43, %s2245_s5 }
  0x71   : > { %951 = vrot.lane.b32.xlu1 %v2922_v33, %s2245_s5  ;;  %949 = vrot.lane.b32.xlu0 %v2940_v43, %s2244_s4 }
  0x75   : > { %1034 = vrot.lane.b32.xlu1 %v2962_v59, %s2245_s5  ;;  %1032 = vrot.lane.b32.xlu0 %v2964_v5, %s2244_s4 }
  0x79   : > { %1051 = vrot.lane.b32.xlu1 %v2975_v4, %s2244_s4  ;;  %968 = vrot.lane.b32.xlu0 %v2962_v59, %s2244_s4 }
  0x7d   : > { %1053 = vrot.lane.b32.xlu1 %v2988_v26, %s2245_s5  ;;  %970 = vrot.lane.b32.xlu0 %v2964_v5, %s2245_s5 }
  0x81   : > { %1115 = vrot.lane.b32.xlu1 %v2975_v4, %s2245_s5  ;;  %1113 = vrot.lane.b32.xlu0 %v2988_v26, %s2244_s4 }
  0x85   : > { %1193 = vrot.lane.b32.xlu1 %v1192_v25, %s2245_s5  ;;  %1187 = vrot.lane.b32.xlu0 %v3011_v37, %s2244_s4 }
  0x89   : > { %1203 = vrot.lane.b32.xlu1 %v3021_v30, %s2244_s4  ;;  %1125 = vrot.lane.b32.xlu0 %v3025_v34, %s2244_s4 }
  0x8d   : > { %1205 = vrot.lane.b32.xlu1 %v3039_v38, %s2245_s5  ;;  %1127 = vrot.lane.b32.xlu0 %v3011_v37, %s2245_s5 }
  0x91   : > { %1267 = vrot.lane.b32.xlu1 %v3039_v38, %s2244_s4  ;;  %1265 = vrot.lane.b32.xlu0 %v1192_v25, %s2244_s4 }
  0x95   : > { %1342 = vrot.lane.b32.xlu1 %v3054_v12, %s2244_s4  ;;  %1269 = vrot.lane.b32.xlu0 %v3021_v30, %s2245_s5 }
  0x97   : > { %v368_v25 = vpop.permute.xlu1 %367  ;;  %v242_v61 = vpop.permute.xlu0 %241 }
  0x98   : > { %v396_v31 = vsel %vm294_vm7, %v2416_v40, %v368_v25  ;;  %v297_v40 = vsel %vm294_vm7, %v229_v22, %v242_v61  ;;  %v1529_v22 = vsel %vm221_vm3, %v2834_v19, %v1528_v48 }
  0x99   : > { %1279 = vrot.lane.b32.xlu1 %v3072_v14, %s2244_s4  ;;  %1344 = vrot.lane.b32.xlu0 %v3072_v14, %s2245_s5  ;;  %v1531_v35 = vsel %vm224_vm4, %v1530_v45, %v1529_v22 }
  0x9a   : > { %v1533_v50 = vsel %vm227_vm5, %v1532_v21, %v1531_v35 }
  0x9b   : > { %v370_v51 = vpop.permute.xlu1 %369  ;;  %v255_v15 = vpop.permute.xlu0 %254  ;;  %v3160_v55 = vpack.c.b16 %v1533_v50, %v1533_v50 }
  0x9c   : > { %v398_v27 = vsel %vm298_vm8, %v396_v31, %v370_v51  ;;  %v300_v24 = vsel %vm298_vm8, %v297_v40, %v255_v15 }
  0x9d   : > { %1281 = vrot.lane.b32.xlu1 %v3054_v12, %s2245_s5  ;;  %1354 = vrot.lane.b32.xlu0 %v3095_v52, %s2244_s4  ;;  %v303_v53 = vsel %vm301_vm9, %v300_v24, %v2396_v32  ;;  %v400_v62 = vsel %vm301_vm9, %v398_v27, %v2474_v2  ;;  %v1463_v32 = vpack.c.b16 %v1462_v29, %v1462_v29 }
  0x9e   : > { %1888 = vmatpush3.bf16.msra.mxu0 %v303_v53  ;;  %1898 = vmatpush3.bf16.msra.mxu1 %v400_v62 }
  0x9f   : > { %v274_v58 = vpop.permute.xlu1 %273  ;;  %v272_v39 = vpop.permute.xlu0 %271  ;;  %1889 = vmatprep.subr.bf16.mxu0 %v2246_v0  ;;  %1899 = vmatprep.subr.bf16.mxu1 %v2246_v0 }
  0xa0   : > { %v307_v25 = vsel %vm294_vm7, %v272_v39, %v274_v58  ;;  %v186_v58 = vld [vmem:[%s3504_s2] sm:$0xff] }
  0xa1   : > { %1416 = vrot.lane.b32.xlu1 %v3113_v41, %s2244_s4  ;;  %1356 = vrot.lane.b32.xlu0 %v3113_v41, %s2245_s5  ;;  %v309_v17 = vsel %vm298_vm8, %v307_v25, %v2476_v3 }
  0xa3   : > { %v374_v2 = vpop.permute.xlu1 %373  ;;  %v372_v57 = vpop.permute.xlu0 %371 }
  0xa4   : > { %v404_v61 = vsel %vm294_vm7, %v372_v57, %v374_v2 }
  0xa5   : > { %1524 = vrot.lane.b32.xlu1 %v1463_v32, %s2244_s4  ;;  %1418 = vrot.lane.b32.xlu0 %v3095_v52, %s2245_s5  ;;  %v406_v19 = vsel %vm298_vm8, %v404_v61, %v2520_v36 }
  0xa7   : > { %v391_v8 = vpop.permute.xlu1 %390  ;;  %v291_v10 = vpop.permute.xlu0 %290 }
  0xa8   : > { %v311_v31 = vsel %vm301_vm9, %v309_v17, %v291_v10  ;;  %v408_v47 = vsel %vm301_vm9, %v406_v19, %v391_v8  ;;  %v549_v40 = vsel %vm294_vm7, %v2520_v36, %v391_v8  ;;  %v471_v56 = vsel %vm294_vm7, %v2476_v3, %v291_v10  ;;  %v3166_v36 = vld [vmem:[%s3503_s1] sm:$0xf] }
  0xa9   : > { %1455 = vrot.lane.b32.xlu1 %v3133_v1, %s2244_s4  ;;  %1526 = vrot.lane.b32.xlu0 %v3133_v1, %s2245_s5 }
  0xaa   : > { %1890 = vmatpush3.bf16.msra.mxu0 %v311_v31  ;;  %1900 = vmatpush3.bf16.msra.mxu1 %v408_v47 }
  0xab   : > { %v393_v9 = vpop.permute.xlu1 %392  ;;  %v293_v60 = vpop.permute.xlu0 %292  ;;  %1891 = vmatprep.subr.bf16.mxu0 %v2246_v0  ;;  %1901 = vmatprep.subr.bf16.mxu1 %v2246_v0 }
  0xac   : > { %v323_v51 = vsel %vm294_vm7, %v293_v60, 0  ;;  %v411_v15 = vsel %vm294_vm7, %v393_v9, 0  ;;  %v472_v27 = vsel %vm298_vm8, %v471_v56, %v293_v60  ;;  %v550_v24 = vsel %vm298_vm8, %v549_v40, %v393_v9 }
  0xad   : > { %1464 = vrot.lane.b32.xlu1 %v1463_v32, %s2245_s5  ;;  %1543 = vrot.lane.b32.xlu0 %v1542_v54, %s2244_s4  ;;  %v474_v62 = vsel %vm301_vm9, %v472_v27, %v2489_v20  ;;  %v552_v29 = vsel %vm301_vm9, %v550_v24, %v2631_v16  ;;  %s1708_s4 = sshll.u32 %s177_s30, 4  ;;  %s3455_s4 = int_to_ptr.vmem [resolvable:$true] %s1708_s4 }
  0xae   : > { %1892 = vmatpush3.bf16.msra.mxu0 %v323_v51  ;;  %1902 = vmatpush3.bf16.msra.mxu1 %v411_v15  ;;  %s2164_s8 = scalar_lea.vmem %s3455_s4, 128 }
  0xaf   : > { %v458_v53 = vpop.permute.xlu1 %457  ;;  %v456_v3 = vpop.permute.xlu0 %455  ;;  %1907 = vmatprep.subr.bf16.mxu0 %v2246_v0  ;;  %1917 = vmatprep.subr.bf16.mxu1 %v2246_v0  ;;  %p2165_p12 = scmp.ne.s32.totalorder %s3455_s4, %s2164_s8 }
  0xb0   : > { %v478_v32 = vsel %vm294_vm7, %v456_v3, %v458_v53 }
  0xb1   : > { %1545 = vrot.lane.b32.xlu0 %v3160_v55, %s2245_s5  ;;  %1894 = vmatmul.mubr.msk.bf16.vlgmr.msra.gmra.mrb[0].mxu0 %vm318_vm10, %v3166_v36  ;;  %v480_v57 = vsel %vm298_vm8, %v478_v32, %v2600_v13  ;;  %p2166_p13 = pnand %p2165_p12, %p2317_p4 }
  0xb2   : > { %1904 = vmatmul.mubr.msk.bf16.vlgmr.msra.gmra.mrb[0].mxu1 %vm318_vm10, %v3166_v36  ;;  %1908 = vmatpush3.bf16.msra.mxu0 %v474_v62 }
  0xb3   : > { %1918 = vmatpush3.bf16.msra.mxu1 %v552_v29  ;;  %v536_v39 = vpop.permute.xlu1 %535  ;;  %v530_v48 = vpop.permute.xlu0 %529  ;;  %1909 = vmatprep.subr.bf16.mxu0 %v2246_v0  ;;  %p2167_p0 = pneg %p2166_p13 }
  0xb4   : > { %v556_v20 = vsel %vm294_vm7, %v530_v48, %v536_v39  ;;  %1919 = vmatprep.subr.bf16.mxu1 %v2246_v0  ;;  %1923 = vmatprep.mubr.msk.bf16.mxu1 %vm2247_vm6, %v2246_v0 }
  0xb5   : > { %1913 = vmatprep.mubr.msk.bf16.mxu0 %vm2247_vm6, %v2246_v0  ;;  %315 = vperm.xlu1 %2115, %v186_v58   ;;  %v558_v2 = vsel %vm298_vm8, %v556_v20, %v2649_v23 }
  0xb7   : > { %v546_v16 = vpop.permute.xlu1 %545  ;;  %v468_v45 = vpop.permute.xlu0 %467 }
  0xb8   : > { %v560_v25 = vsel %vm301_vm9, %v558_v2, %v546_v16  ;;  %v482_v61 = vsel %vm301_vm9, %v480_v57, %v468_v45  ;;  %v700_v22 = vsel %vm294_vm7, %v2649_v23, %v546_v16 }
  0xb9   : > { %1910 = vmatpush3.bf16.msra.mxu0 %v482_v61  ;;  %1920 = vmatpush3.bf16.msra.mxu1 %v560_v25 }
  0xba   : > { %1911 = vmatprep.subr.bf16.mxu0 %v2246_v0  ;;  %1921 = vmatprep.subr.bf16.mxu1 %v2246_v0 }
  0xbb   : > { %v548_v21 = vpop.permute.xlu1 %547  ;;  %v470_v63 = vpop.permute.xlu0 %469 }
  0xbc   : > { %v563_v8 = vsel %vm294_vm7, %v548_v21, 0  ;;  %v485_v10 = vsel %vm294_vm7, %v470_v63, 0  ;;  %v701_v17 = vsel %vm298_vm8, %v700_v22, %v548_v21 }
  0xbd   : > { %1912 = vmatpush3.bf16.msra.mxu0 %v485_v10  ;;  %1922 = vmatpush3.bf16.msra.mxu1 %v563_v8  ;;  %v703_v31 = vsel %vm301_vm9, %v701_v17, %v2805_v11 }
  0xbe   : > { %1937 = vmatprep.subr.bf16.mxu1 %v2246_v0  ;;  %1927 = vmatprep.subr.bf16.mxu0 %v2246_v0 }
  0xbf   : > { %v610_v19 = vpop.permute.xlu1 %609  ;;  %v608_v23 = vpop.permute.xlu0 %607 }
  0xc0   : > { %v626_v35 = vsel %vm294_vm7, %v2600_v13, %v608_v23  ;;  %1924 = vmatmul.mubr.msk.bf16.vlgmr.msra.gmra.mrb[4].mxu1 %vm318_vm10, %v3166_v36  ;;  %1914 = vmatmul.mubr.msk.bf16.vlgmr.msra.gmra.mrb[4].mxu0 %vm318_vm10, %v3166_v36 }
  0xc1   : > { %v627_v47 = vsel %vm298_vm8, %v626_v35, %v470_v63  ;;  %1938 = vmatpush3.bf16.msra.mxu1 %v703_v31  ;;  %1933 = vmatprep.mubr.msk.bf16.mxu0 %vm2247_vm6, %v2246_v0 }
  0xc2   : > { %v629_v54 = vsel %vm301_vm9, %v627_v47, %v2618_v49  ;;  %1939 = vmatprep.subr.bf16.mxu1 %v2246_v0  ;;  %1943 = vmatprep.mubr.msk.bf16.mxu1 %vm2247_vm6, %v2246_v0 }
  0xc3   : > { %v685_v13 = vpop.permute.xlu1 %684  ;;  %v612_v50 = vpop.permute.xlu0 %611  ;;  %1928 = vmatpush3.bf16.msra.mxu0 %v629_v54 }
  0xc4   : > { %v633_v11 = vsel %vm294_vm7, %v610_v19, %v612_v50  ;;  %1929 = vmatprep.subr.bf16.mxu0 %v2246_v0 }
  0xc5   : > { %v635_v60 = vsel %vm298_vm8, %v633_v11, %v2735_v6 }
  0xc7   : > { %v622_v9 = vpop.permute.xlu1 %621  ;;  %v687_v40 = vpop.permute.xlu0 %686 }
  0xc8   : > { %v637_v51 = vsel %vm301_vm9, %v635_v60, %v622_v9  ;;  %v707_v49 = vsel %vm294_vm7, %v685_v13, %v687_v40  ;;  %v808_v15 = vsel %vm294_vm7, %v2735_v6, %v622_v9 }
  0xc9   : > { %1930 = vmatpush3.bf16.msra.mxu0 %v637_v51  ;;  %v709_v27 = vsel %vm298_vm8, %v707_v49, %v2871_v28 }
  0xca   : > { %1931 = vmatprep.subr.bf16.mxu0 %v2246_v0 }
  0xcb   : > { %v624_v56 = vpop.permute.xlu1 %623  ;;  %v697_v24 = vpop.permute.xlu0 %696 }
  0xcc   : > { %v640_v53 = vsel %vm294_vm7, %v624_v56, 0  ;;  %v711_v3 = vsel %vm301_vm9, %v709_v27, %v697_v24  ;;  %v809_v62 = vsel %vm298_vm8, %v808_v15, %v624_v56  ;;  %v889_v58 = vsel %vm294_vm7, %v2871_v28, %v697_v24 }
  0xcd   : > { %1932 = vmatpush3.bf16.msra.mxu0 %v640_v53  ;;  %1940 = vmatpush3.bf16.msra.mxu1 %v711_v3  ;;  %v811_v48 = vsel %vm301_vm9, %v809_v62, %v2851_v42 }
  0xce   : > { %1941 = vmatprep.subr.bf16.mxu1 %v2246_v0  ;;  %1947 = vmatprep.subr.bf16.mxu0 %v2246_v0 }
  0xcf   : > { %v759_v6 = vpop.permute.xlu1 %758  ;;  %v699_v29 = vpop.permute.xlu0 %698 }
  0xd0   : > { %v714_v39 = vsel %vm294_vm7, %v699_v29, 0  ;;  %1934 = vmatmul.mubr.msk.bf16.vlgmr.msra.gmra.mrb[8].mxu0 %vm318_vm10, %v3166_v36  ;;  %v890_v32 = vsel %vm298_vm8, %v889_v58, %v699_v29 }
  0xd1   : > { %1942 = vmatpush3.bf16.msra.mxu1 %v714_v39  ;;  %1948 = vmatpush3.bf16.msra.mxu0 %v811_v48  ;;  %v892_v42 = vsel %vm301_vm9, %v890_v32, %v2909_v7 }
  0xd2   : > { %1957 = vmatprep.subr.bf16.mxu1 %v2246_v0  ;;  %1949 = vmatprep.subr.bf16.mxu0 %v2246_v0 }
  0xd3   : > { %v867_v20 = vpop.permute.xlu1 %866  ;;  %v761_v16 = vpop.permute.xlu0 %760  ;;  %1953 = vmatprep.mubr.msk.bf16.mxu0 %vm2247_vm6, %v2246_v0 }
  0xd4   : > { %v815_v28 = vsel %vm294_vm7, %v759_v6, %v761_v16  ;;  %1944 = vmatmul.mubr.msk.bf16.vlgmr.msra.gmra.mrb[8].mxu1 %vm318_vm10, %v3166_v36 }
  0xd5   : > { %1958 = vmatpush3.bf16.msra.mxu1 %v892_v42  ;;  %1963 = vmatprep.mubr.msk.bf16.mxu1 %vm2247_vm6, %v2246_v0  ;;  %v817_v57 = vsel %vm298_vm8, %v815_v28, %v2938_v44 }
  0xd6   : > { %1959 = vmatprep.subr.bf16.mxu1 %v2246_v0 }
  0xd7   : > { %v798_v2 = vpop.permute.xlu1 %797  ;;  %v869_v45 = vpop.permute.xlu0 %868 }
  0xd8   : > { %v819_v25 = vsel %vm301_vm9, %v817_v57, %v798_v2  ;;  %v896_v61 = vsel %vm294_vm7, %v867_v20, %v869_v45  ;;  %v973_v44 = vsel %vm294_vm7, %v2893_v18, %v798_v2 }
  0xd9   : > { %1950 = vmatpush3.bf16.msra.mxu0 %v819_v25  ;;  %v898_v7 = vsel %vm298_vm8, %v896_v61, %v2940_v43 }
  0xda   : > { %1951 = vmatprep.subr.bf16.mxu0 %v2246_v0 }
  0xdb   : > { %v807_v22 = vpop.permute.xlu1 %806  ;;  %v886_v21 = vpop.permute.xlu0 %885 }
  0xdc   : > { %v822_v63 = vsel %vm294_vm7, %v807_v22, 0  ;;  %v900_v8 = vsel %vm301_vm9, %v898_v7, %v886_v21  ;;  %v1055_v19 = vsel %vm294_vm7, %v2940_v43, %v886_v21 }
  0xdd   : > { %1960 = vmatpush3.bf16.msra.mxu1 %v900_v8  ;;  %1952 = vmatpush3.bf16.msra.mxu0 %v822_v63 }
  0xde   : > { %1961 = vmatprep.subr.bf16.mxu1 %v2246_v0  ;;  %1967 = vmatprep.subr.bf16.mxu0 %v2246_v0 }
  0xdf   : > { %v948_v10 = vpop.permute.xlu1 %947  ;;  %v888_v17 = vpop.permute.xlu0 %887 }
  0xe0   : > { %v975_v23 = vsel %vm298_vm8, %v973_v44, %v948_v10  ;;  %v903_v35 = vsel %vm294_vm7, %v888_v17, 0  ;;  %1954 = vmatmul.mubr.msk.bf16.vlgmr.msra.gmra.mrb[12].mxu0 %vm318_vm10, %v3166_v36  ;;  %v1056_v31 = vsel %vm298_vm8, %v1055_v19, %v888_v17 }
  0xe1   : > { %1962 = vmatpush3.bf16.msra.mxu1 %v903_v35  ;;  %v977_v47 = vsel %vm301_vm9, %v975_v23, %v2922_v33  ;;  %1973 = vmatprep.mubr.msk.bf16.mxu0 %vm2247_vm6, %v2246_v0  ;;  %v1058_v54 = vsel %vm301_vm9, %v1056_v31, %v2962_v59 }
  0xe2   : > { %1968 = vmatpush3.bf16.msra.mxu0 %v977_v47  ;;  %1977 = vmatprep.subr.bf16.mxu1 %v2246_v0 }
  0xe3   : > { %v952_v18 = vpop.permute.xlu1 %951  ;;  %v950_v43 = vpop.permute.xlu0 %949  ;;  %1969 = vmatprep.subr.bf16.mxu0 %v2246_v0 }
  0xe4   : > { %1964 = vmatmul.mubr.msk.bf16.vlgmr.msra.gmra.mrb[12].mxu1 %vm318_vm10, %v3166_v36  ;;  %v981_v50 = vsel %vm294_vm7, %v950_v43, %v952_v18 }
  0xe5   : > { %1978 = vmatpush3.bf16.msra.mxu1 %v1058_v54  ;;  %1983 = vmatprep.mubr.msk.bf16.mxu1 %vm2247_vm6, %v2246_v0  ;;  %v983_v40 = vsel %vm298_vm8, %v981_v50, %v2964_v5 }
  0xe6   : > { %1979 = vmatprep.subr.bf16.mxu1 %v2246_v0 }
  0xe7   : > { %v1035_v33 = vpop.permute.xlu1 %1034  ;;  %v1033_v13 = vpop.permute.xlu0 %1032 }
  0xe8   : > { %v1062_v11 = vsel %vm294_vm7, %v1033_v13, %v1035_v33 }
  0xe9   : > { %v1064_v60 = vsel %vm298_vm8, %v1062_v11, %v2988_v26 }
  0xeb   : > { %v1052_v9 = vpop.permute.xlu1 %1051  ;;  %v969_v59 = vpop.permute.xlu0 %968 }
  0xec   : > { %v1066_v51 = vsel %vm301_vm9, %v1064_v60, %v1052_v9  ;;  %v985_v49 = vsel %vm301_vm9, %v983_v40, %v969_v59  ;;  %v1207_v15 = vsel %vm294_vm7, %v2988_v26, %v1052_v9  ;;  %v1129_v24 = vsel %vm294_vm7, %v2964_v5, %v969_v59 }
  0xed   : > { %1970 = vmatpush3.bf16.msra.mxu0 %v985_v49  ;;  %1980 = vmatpush3.bf16.msra.mxu1 %v1066_v51 }
  0xee   : > { %1971 = vmatprep.subr.bf16.mxu0 %v2246_v0  ;;  %1981 = vmatprep.subr.bf16.mxu1 %v2246_v0 }
  0xef   : > { %v1054_v56 = vpop.permute.xlu1 %1053  ;;  %v971_v27 = vpop.permute.xlu0 %970 }
  0xf0   : > { %v1069_v53 = vsel %vm294_vm7, %v1054_v56, 0  ;;  %v988_v3 = vsel %vm294_vm7, %v971_v27, 0  ;;  %v1208_v62 = vsel %vm298_vm8, %v1207_v15, %v1054_v56  ;;  %v1130_v6 = vsel %vm298_vm8, %v1129_v24, %v971_v27 }
  0xf1   : > { %1972 = vmatpush3.bf16.msra.mxu0 %v988_v3  ;;  %1982 = vmatpush3.bf16.msra.mxu1 %v1069_v53  ;;  %v1132_v5 = vsel %vm301_vm9, %v1130_v6, %v2975_v4  ;;  %v1210_v58 = vsel %vm301_vm9, %v1208_v62, %v3025_v34 }
  0xf2   : > { %1987 = vmatprep.subr.bf16.mxu0 %v2246_v0  ;;  %1997 = vmatprep.subr.bf16.mxu1 %v2246_v0 }
  0xf3   : > { %v1116_v26 = vpop.permute.xlu1 %1115  ;;  %v1114_v29 = vpop.permute.xlu0 %1113 }
  0xf4   : > { %1984 = vmatmul.mubr.msk.bf16.vlgmr.msra.gmra.mrb[16].mxu1 %vm318_vm10, %v3166_v36  ;;  %1974 = vmatmul.mubr.msk.bf16.vlgmr.msra.gmra.mrb[16].mxu0 %vm318_vm10, %v3166_v36  ;;  %v1136_v32 = vsel %vm294_vm7, %v1114_v29, %v1116_v26 }
  0xf5   : > { %1988 = vmatpush3.bf16.msra.mxu0 %v1132_v5  ;;  %1998 = vmatpush3.bf16.msra.mxu1 %v1210_v58  ;;  %v1138_v16 = vsel %vm298_vm8, %v1136_v32, %v3011_v37 }
  0xf6   : > { %1989 = vmatprep.subr.bf16.mxu0 %v2246_v0  ;;  %1999 = vmatprep.subr.bf16.mxu1 %v2246_v0 }
  0xf7   : > { %v1194_v39 = vpop.permute.xlu1 %1193  ;;  %v1188_v48 = vpop.permute.xlu0 %1187  ;;  %2003 = vmatprep.mubr.msk.bf16.mxu1 %vm2247_vm6, %v2246_v0  ;;  %1993 = vmatprep.mubr.msk.bf16.mxu0 %vm2247_vm6, %v2246_v0 }
  0xf8   : > { %v1214_v4 = vsel %vm294_vm7, %v1188_v48, %v1194_v39 }
  0xf9   : > { %v1216_v34 = vsel %vm298_vm8, %v1214_v4, %v3039_v38 }
  0xfb   : > { %v1204_v20 = vpop.permute.xlu1 %1203  ;;  %v1126_v28 = vpop.permute.xlu0 %1125 }
  0xfc   : > { %v1218_v42 = vsel %vm301_vm9, %v1216_v34, %v1204_v20  ;;  %v1140_v2 = vsel %vm301_vm9, %v1138_v16, %v1126_v28  ;;  %v1358_v57 = vsel %vm294_vm7, %v3039_v38, %v1204_v20 }
  0xfd   : > { %1990 = vmatpush3.bf16.msra.mxu0 %v1140_v2  ;;  %2000 = vmatpush3.bf16.msra.mxu1 %v1218_v42 }
  0xfe   : > { %1991 = vmatprep.subr.bf16.mxu0 %v2246_v0  ;;  %2001 = vmatprep.subr.bf16.mxu1 %v2246_v0 }
  0xff   : > { %v1206_v45 = vpop.permute.xlu1 %1205  ;;  %v1128_v25 = vpop.permute.xlu0 %1127 }
 0x100   : > { %v1221_v61 = vsel %vm294_vm7, %v1206_v45, 0  ;;  %v1143_v22 = vsel %vm294_vm7, %v1128_v25, 0  ;;  %v1359_v7 = vsel %vm298_vm8, %v1358_v57, %v1206_v45 }
 0x101   : > { %1992 = vmatpush3.bf16.msra.mxu0 %v1143_v22  ;;  %2002 = vmatpush3.bf16.msra.mxu1 %v1221_v61  ;;  %v1361_v8 = vsel %vm301_vm9, %v1359_v7, %v3072_v14 }
 0x102   : > { %2017 = vmatprep.subr.bf16.mxu1 %v2246_v0  ;;  %2007 = vmatprep.subr.bf16.mxu0 %v2246_v0 }
 0x103   : > { %v1268_v21 = vpop.permute.xlu1 %1267  ;;  %v1266_v38 = vpop.permute.xlu0 %1265 }
 0x104   : > { %v1284_v63 = vsel %vm294_vm7, %v3011_v37, %v1266_v38  ;;  %1994 = vmatmul.mubr.msk.bf16.vlgmr.msra.gmra.mrb[20].mxu0 %vm318_vm10, %v3166_v36  ;;  %2004 = vmatmul.mubr.msk.bf16.vlgmr.msra.gmra.mrb[20].mxu1 %vm318_vm10, %v3166_v36 }
 0x105   : > { %v1285_v44 = vsel %vm298_vm8, %v1284_v63, %v1128_v25  ;;  %2018 = vmatpush3.bf16.msra.mxu1 %v1361_v8  ;;  %2013 = vmatprep.mubr.msk.bf16.mxu0 %vm2247_vm6, %v2246_v0 }
 0x106   : > { %v1287_v10 = vsel %vm301_vm9, %v1285_v44, %v3021_v30  ;;  %2019 = vmatprep.subr.bf16.mxu1 %v2246_v0  ;;  %2023 = vmatprep.mubr.msk.bf16.mxu1 %vm2247_vm6, %v2246_v0 }
 0x107   : > { %v1343_v37 = vpop.permute.xlu1 %1342  ;;  %v1270_v17 = vpop.permute.xlu0 %1269  ;;  %2008 = vmatpush3.bf16.msra.mxu0 %v1287_v10 }
 0x108   : > { %v1291_v19 = vsel %vm294_vm7, %v1268_v21, %v1270_v17  ;;  %2009 = vmatprep.subr.bf16.mxu0 %v2246_v0 }
 0x109   : > { %v1293_v23 = vsel %vm298_vm8, %v1291_v19, %v3054_v12 }
 0x10b   : > { %v1280_v14 = vpop.permute.xlu1 %1279  ;;  %v1345_v35 = vpop.permute.xlu0 %1344 }
 0x10c   : > { %v1295_v31 = vsel %vm301_vm9, %v1293_v23, %v1280_v14  ;;  %v1365_v30 = vsel %vm294_vm7, %v1343_v37, %v1345_v35  ;;  %v1466_v47 = vsel %vm294_vm7, %v3054_v12, %v1280_v14 }
 0x10d   : > { %2010 = vmatpush3.bf16.msra.mxu0 %v1295_v31  ;;  %v1367_v43 = vsel %vm298_vm8, %v1365_v30, %v3113_v41 }
 0x10e   : > { %2011 = vmatprep.subr.bf16.mxu0 %v2246_v0 }
 0x10f   : > { %v1282_v18 = vpop.permute.xlu1 %1281  ;;  %v1355_v54 = vpop.permute.xlu0 %1354 }
 0x110   : > { %v1298_v33 = vsel %vm294_vm7, %v1282_v18, 0  ;;  %v1369_v13 = vsel %vm301_vm9, %v1367_v43, %v1355_v54  ;;  %v1467_v50 = vsel %vm298_vm8, %v1466_v47, %v1282_v18  ;;  %v1547_v9 = vsel %vm294_vm7, %v3113_v41, %v1355_v54 }
 0x111   : > { %2012 = vmatpush3.bf16.msra.mxu0 %v1298_v33  ;;  %2020 = vmatpush3.bf16.msra.mxu1 %v1369_v13  ;;  %v1469_v40 = vsel %vm301_vm9, %v1467_v50, %v3095_v52  ;;  %v1442_v41 = vpack.c.b16 %v3085_v46, %v3085_v46 }
 0x112   : > { %2021 = vmatprep.subr.bf16.mxu1 %v2246_v0  ;;  %2027 = vmatprep.subr.bf16.mxu0 %v2246_v0 }
 0x113   : > { %v1417_v12 = vpop.permute.xlu1 %1416  ;;  %v1357_v11 = vpop.permute.xlu0 %1356 }
 0x114   : > { %v1372_v60 = vsel %vm294_vm7, %v1357_v11, 0  ;;  %2014 = vmatmul.mubr.msk.bf16.vlgmr.msra.gmra.mrb[24].mxu0 %vm318_vm10, %v3166_v36  ;;  %v1548_v59 = vsel %vm298_vm8, %v1547_v9, %v1357_v11 }
 0x115   : > { %2022 = vmatpush3.bf16.msra.mxu1 %v1372_v60  ;;  %2028 = vmatpush3.bf16.msra.mxu0 %v1469_v40  ;;  %v1550_v52 = vsel %vm301_vm9, %v1548_v59, %v3133_v1 }
 0x116   : > { %2037 = vmatprep.subr.bf16.mxu1 %v2246_v0  ;;  %2029 = vmatprep.subr.bf16.mxu0 %v2246_v0 }
 0x117   : > { %v1525_v51 = vpop.permute.xlu1 %1524  ;;  %v1419_v49 = vpop.permute.xlu0 %1418  ;;  %2033 = vmatprep.mubr.msk.bf16.mxu0 %vm2247_vm6, %v2246_v0 }
 0x118   : > { %v1473_v15 = vsel %vm294_vm7, %v1417_v12, %v1419_v49  ;;  %2024 = vmatmul.mubr.msk.bf16.vlgmr.msra.gmra.mrb[24].mxu1 %vm318_vm10, %v3166_v36 }
 0x119   : > { %2038 = vmatpush3.bf16.msra.mxu1 %v1550_v52  ;;  %2043 = vmatprep.mubr.msk.bf16.mxu1 %vm2247_vm6, %v2246_v0  ;;  %v1475_v46 = vsel %vm298_vm8, %v1473_v15, %v1442_v41 }
 0x11a   : > { %2039 = vmatprep.subr.bf16.mxu1 %v2246_v0 }
 0x11b   : > { %v1456_v56 = vpop.permute.xlu1 %1455  ;;  %v1527_v27 = vpop.permute.xlu0 %1526 }
 0x11c   : > { %v1477_v24 = vsel %vm301_vm9, %v1475_v46, %v1456_v56  ;;  %v1554_v53 = vsel %vm294_vm7, %v1525_v51, %v1527_v27 }
 0x11d   : > { %2030 = vmatpush3.bf16.msra.mxu0 %v1477_v24  ;;  %v1556_v1 = vsel %vm298_vm8, %v1554_v53, %v3160_v55 }
 0x11e   : > { %2031 = vmatprep.subr.bf16.mxu0 %v2246_v0 }
 0x11f   : > { %v1465_v3 = vpop.permute.xlu1 %1464  ;;  %v1544_v62 = vpop.permute.xlu0 %1543 }
 0x120   : > { %v1480_v6 = vsel %vm294_vm7, %v1465_v3, 0  ;;  %v1558_v26 = vsel %vm301_vm9, %v1556_v1, %v1544_v62 }
 0x121   : > { %2032 = vmatpush3.bf16.msra.mxu0 %v1480_v6  ;;  %2040 = vmatpush3.bf16.msra.mxu1 %v1558_v26 }
 0x122   : > { %2041 = vmatprep.subr.bf16.mxu1 %v2246_v0 }
 0x123   : > { %v1546_v29 = vpop.permute.xlu0 %1545 }
 0x124   : > { %v1561_v5 = vsel %vm294_vm7, %v1546_v29, 0  ;;  %2034 = vmatmul.mubr.msk.bf16.vlgmr.msra.gmra.mrb[28].mxu0 %vm318_vm10, %v3166_v36 }
 0x125   : > { %2042 = vmatpush3.bf16.msra.mxu1 %v1561_v5 }
 0x128   : > { %2044 = vmatmul.mubr.msk.bf16.vlgmr.msra.gmra.mrb[28].mxu1 %vm318_vm10, %v3166_v36 }
 0x134   : > { %v3417_v31 = vpop.permute.xlu1 %315 }
 0x184   : > { %v3411_v55 = vpop.f32.mrb[0].mxu0 }
 0x185   : > { %v1895_v58 = vpop.f32.mrb[1].mxu0  ;;  %v447_v39 = vpop.f32.mrb[0].mxu1 }
 0x186   : > { %v362_v48 = vpop.f32.mrb[2].mxu0  ;;  %v1905_v32 = vpop.f32.mrb[1].mxu1  ;;  %v448_v30 = vadd.f32 %v447_v39, %v3417_v31 }
 0x187   : > { %v1896_v4 = vpop.f32.mrb[3].mxu0  ;;  %v450_v20 = vpop.f32.mrb[2].mxu1 }
 0x188   : > { %v1906_v34 = vpop.f32.mrb[3].mxu1  ;;  %v453_v43 = vmax.f32 %v448_v30, 0.0 }
 0x18a   : > { %v454_v40 = vmin.f32 %v453_v43, 6.0 }
 0x193   : > { %v521_v0 = vpop.f32.mrb[4].mxu0  ;;  %v599_v16 = vpop.f32.mrb[4].mxu1 }
 0x194   : > { %v1915_v28 = vpop.f32.mrb[5].mxu0  ;;  %v1925_v42 = vpop.f32.mrb[5].mxu1  ;;  %v522_v49 = vadd.f32 %v521_v0, %v3417_v31  ;;  %v600_v41 = vadd.f32 %v599_v16, %v3417_v31 }
 0x195   : > { %v524_v2 = vpop.f32.mrb[6].mxu0  ;;  %v602_v57 = vpop.f32.mrb[6].mxu1 }
 0x196   : > { %v1916_v45 = vpop.f32.mrb[7].mxu0  ;;  %v1926_v25 = vpop.f32.mrb[7].mxu1  ;;  %v527_v56 = vmax.f32 %v522_v49, 0.0  ;;  %v605_v46 = vmax.f32 %v600_v41, 0.0 }
 0x198   : > { %v528_v58 = vmin.f32 %v527_v56, 6.0  ;;  %v606_v39 = vmin.f32 %v605_v46, 6.0 }
 0x1a3   : > { %v676_v61 = vpop.f32.mrb[8].mxu0 }
 0x1a4   : > { %v1935_v22 = vpop.f32.mrb[9].mxu0  ;;  %v677_v34 = vadd.f32 %v676_v61, %v3417_v31 }
 0x1a5   : > { %v679_v36 = vpop.f32.mrb[10].mxu0 }
 0x1a6   : > { %v1936_v7 = vpop.f32.mrb[11].mxu0  ;;  %v682_v16 = vmax.f32 %v677_v34, 0.0 }
 0x1a7   : > { %v750_v21 = vpop.f32.mrb[8].mxu1 }
 0x1a8   : > { %v1945_v38 = vpop.f32.mrb[9].mxu1  ;;  %v751_v28 = vadd.f32 %v750_v21, %v3417_v31  ;;  %v683_v36 = vmin.f32 %v682_v16, 6.0 }
 0x1a9   : > { %v753_v63 = vpop.f32.mrb[10].mxu1 }
 0x1aa   : > { %v1946_v8 = vpop.f32.mrb[11].mxu1  ;;  %v756_v7 = vmax.f32 %v751_v28, 0.0 }
 0x1b3   : > { %v3413_v44 = vpop.f32.mrb[12].mxu0 }
 0x1b4   : > { %v1955_v10 = vpop.f32.mrb[13].mxu0 }
 0x1b5   : > { %v861_v37 = vpop.f32.mrb[14].mxu0 }
 0x1b6   : > { %v1956_v17 = vpop.f32.mrb[15].mxu0 }
 0x1b7   : > { %v3415_v19 = vpop.f32.mrb[12].mxu1 }
 0x1b8   : > { %v1965_v14 = vpop.f32.mrb[13].mxu1 }
 0x1b9   : > { %v942_v23 = vpop.f32.mrb[14].mxu1  ;;  %v757_v14 = vmin.f32 %v756_v7, 6.0 }
 0x1ba   : > { %v1966_v35 = vpop.f32.mrb[15].mxu1 }
 0x1bb   : > { %v859_v35 = vadd.f32 %v3413_v44, %v3417_v31 }
 0x1bd   : > { %v864_v43 = vmax.f32 %v859_v35, 0.0 }
 0x1c7   : > { %v1105_v47 = vpop.f32.mrb[16].mxu1  ;;  %v3420_v18 = vpop.f32.mrb[16].mxu0 }
 0x1c8   : > { %v1106_v54 = vadd.f32 %v1105_v47, %v3417_v31  ;;  %v1975_v33 = vpop.f32.mrb[17].mxu0  ;;  %v1985_v13 = vpop.f32.mrb[17].mxu1  ;;  %v940_v47 = vadd.f32 %v3415_v19, %v3417_v31  ;;  %v1025_v46 = vadd.f32 %v3420_v18, %v3417_v31 }
 0x1c9   : > { %v1027_v50 = vpop.f32.mrb[18].mxu0  ;;  %v1108_v12 = vpop.f32.mrb[18].mxu1 }
 0x1ca   : > { %v1111_v11 = vmax.f32 %v1106_v54, 0.0  ;;  %v1976_v9 = vpop.f32.mrb[19].mxu0  ;;  %v1986_v60 = vpop.f32.mrb[19].mxu1 }
 0x1cb   : > { %v945_v9 = vmax.f32 %v940_v47, 0.0  ;;  %v865_v60 = vmin.f32 %v864_v43, 6.0 }
 0x1cc   : > { %v1112_v59 = vmin.f32 %v1111_v11, 6.0 }
 0x1ce   : > { %v2116_v51 = vpack.i.bf16 %v1112_v59, %v454_v40 }
 0x1d0   : > { %2117 = vrot.lane.b32.xlu0 %v2116_v51, %s2249_s10  ;;  %s2168_s10 = sshll.u32 %s2256_s9, 4  ;;  %s2169_s10 = int_to_ptr.vmem [resolvable:$false] %s2168_s10 }
 0x1d1   : > { %p2171_p1 = scmp.lt.s32.totalorder %s3455_s4, %s2169_s10 }
 0x1d7   : > { %v1179_v15 = vpop.f32.mrb[20].mxu0  ;;  %v1257_v52 = vpop.f32.mrb[20].mxu1 }
 0x1d8   : > { %v1180_v27 = vadd.f32 %v1179_v15, %v3417_v31  ;;  %v1258_v24 = vadd.f32 %v1257_v52, %v3417_v31  ;;  %v1995_v53 = vpop.f32.mrb[21].mxu0  ;;  %v2005_v3 = vpop.f32.mrb[21].mxu1  ;;  %v946_v52 = vmin.f32 %v945_v9, 6.0 }
 0x1d9   : > { %v1182_v1 = vpop.f32.mrb[22].mxu0  ;;  %v1260_v62 = vpop.f32.mrb[22].mxu1  ;;  %v1030_v3 = vmax.f32 %v1025_v46, 0.0 }
 0x1da   : > { %v1185_v6 = vmax.f32 %v1180_v27, 0.0  ;;  %v1263_v26 = vmax.f32 %v1258_v24, 0.0  ;;  %v1996_v29 = vpop.f32.mrb[23].mxu0  ;;  %v2006_v5 = vpop.f32.mrb[23].mxu1  ;;  %v360_v27 = vadd.f32 %v3411_v55, %v3417_v31 }
 0x1dc   : > { %v1186_v48 = vmin.f32 %v1185_v6, 6.0  ;;  %v1264_v32 = vmin.f32 %v1263_v26, 6.0  ;;  %v365_v1 = vmax.f32 %v360_v27, 0.0 }
 0x1de   : > { %v2121_v4 = vpack.i.bf16 %v1186_v48, %v528_v58  ;;  %v2126_v20 = vpack.i.bf16 %v1264_v32, %v606_v39  ;;  %v1031_v39 = vmin.f32 %v1030_v3, 6.0  ;;  %v366_v48 = vmin.f32 %v365_v1, 6.0 }
 0x1e0   : > { %2127 = vrot.lane.b32.xlu0 %v2126_v20, %s2250_s11  ;;  %2122 = vrot.lane.b32.xlu1 %v2121_v4, %s2251_s18  ;;  %s2170_s11 = scalar_lea.vmem %s2169_s10, 256 }
 0x1e1   : > { %p2172_p2 = scmp.lt.s32.totalorder %s2170_s11, %s2164_s8 }
 0x1e3   : > { %p2173_p3 = por %p2172_p2, %p2171_p1 }
 0x1e5   : > { %p2174_p5 = pnand %p2173_p3, %p2167_p0 }
 0x1e7   : > { %v1334_v0 = vpop.f32.mrb[24].mxu0 }
 0x1e8   : > { %v1335_v42 = vadd.f32 %v1334_v0, %v3417_v31  ;;  %v2015_v2 = vpop.f32.mrb[25].mxu0 }
 0x1e9   : > { %v1337_v57 = vpop.f32.mrb[26].mxu0 }
 0x1ea   : > { %v1340_v45 = vmax.f32 %v1335_v42, 0.0  ;;  %v2016_v25 = vpop.f32.mrb[27].mxu0 }
 0x1eb   : > { %v1408_v22 = vpop.f32.mrb[24].mxu1 }
 0x1ec   : > { %v1341_v38 = vmin.f32 %v1340_v45, 6.0  ;;  %v1409_v63 = vadd.f32 %v1408_v22, %v3417_v31  ;;  %v2025_v8 = vpop.f32.mrb[25].mxu1 }
 0x1ed   : > { %v1411_v10 = vpop.f32.mrb[26].mxu1 }
 0x1ee   : > { %v2131_v37 = vpack.i.bf16 %v1341_v38, %v683_v36  ;;  %v1414_v61 = vmax.f32 %v1409_v63, 0.0  ;;  %v2026_v17 = vpop.f32.mrb[27].mxu1 }
 0x1f0   : > { %v1415_v23 = vmin.f32 %v1414_v61, 6.0  ;;  %2132 = vrot.lane.b32.xlu1 %v2131_v37, %s2252_s19 }
 0x1f2   : > { %v2136_v21 = vpack.i.bf16 %v1415_v23, %v757_v14 }
 0x1f4   : > { %2137 = vrot.lane.b32.xlu0 %v2136_v21, %s2253_s21 }
 0x1f7   : > { %v1516_v30 = vpop.f32.mrb[28].mxu0 }
 0x1f8   : > { %v1517_v54 = vadd.f32 %v1516_v30, %v3417_v31  ;;  %v2035_v33 = vpop.f32.mrb[29].mxu0 }
 0x1f9   : > { %v1519_v13 = vpop.f32.mrb[30].mxu0 }
 0x1fa   : > { %v1522_v50 = vmax.f32 %v1517_v54, 0.0  ;;  %v2036_v12 = vpop.f32.mrb[31].mxu0 }
 0x1fb   : > { %v1597_v11 = vpop.f32.mrb[28].mxu1 }
 0x1fc   : > { %v1523_v40 = vmin.f32 %v1522_v50, 6.0  ;;  %v1598_v59 = vadd.f32 %v1597_v11, %v3417_v31  ;;  %v2045_v44 = vpop.f32.mrb[29].mxu1 }
 0x1fd   : > { %v1600_v51 = vpop.f32.mrb[30].mxu1 }
 0x1fe   : > { %v2141_v49 = vpack.i.bf16 %v1523_v40, %v865_v60  ;;  %v1603_v41 = vmax.f32 %v1598_v59, 0.0  ;;  %v2046_v15 = vpop.f32.mrb[31].mxu1 }
 0x200   : > { %v1604_v19 = vmin.f32 %v1603_v41, 6.0  ;;  %2142 = vrot.lane.b32.xlu1 %v2141_v49, %s2254_s23 }
 0x202   : > { %v2146_v56 = vpack.i.bf16 %v1604_v19, %v946_v52 }
 0x204   : > { %2147 = vrot.lane.b32.xlu0 %v2146_v56, %s2255_s26 }
 0x242   : > { %v2118_v24 = vpop.permute.xlu0 %2117 }
 0x243   : > { %v2120_v6 = vunpack.i.h.bf16 %v2118_v24  ;;  %v2119_v26 = vunpack.i.l.bf16 %v2118_v24 }
 0x245   : > { %v1662_v32 = vsel %vm1661_vm11, %v366_v48, %v2119_v26  ;;  %v1675_v55 = vsel %vm1661_vm11, %v1031_v39, %v2120_v6 }
 0x252   : > { %v2123_v53 = vpop.permute.xlu1 %2122  ;;  %v2128_v62 = vpop.permute.xlu0 %2127 }
 0x253   : > { %v2125_v29 = vunpack.i.h.bf16 %v2123_v53  ;;  %v2124_v5 = vunpack.i.l.bf16 %v2123_v53  ;;  %v2130_v31 = vunpack.i.h.bf16 %v2128_v62  ;;  %v2129_v4 = vunpack.i.l.bf16 %v2128_v62 }
 0x255   : > { %v1676_v20 = vsel %vm1663_vm12, %v1675_v55, %v2125_v29  ;;  %v1664_v34 = vsel %vm1663_vm12, %v1662_v32, %v2124_v5 }
 0x256   : > { %v1666_v25 = vsel %vm1665_vm13, %v1664_v34, %v2129_v4  ;;  %v1677_v22 = vsel %vm1665_vm13, %v1676_v20, %v2130_v31 }
 0x262   : > { %v2133_v58 = vpop.permute.xlu1 %2132 }
 0x263   : > { %v2135_v0 = vunpack.i.h.bf16 %v2133_v58  ;;  %v2134_v16 = vunpack.i.l.bf16 %v2133_v58 }
 0x265   : > { %v1678_v36 = vsel %vm1667_vm14, %v1677_v22, %v2135_v0  ;;  %v1668_v7 = vsel %vm1667_vm14, %v1666_v25, %v2134_v16 }
 0x266   : > { %v2138_v18 = vpop.permute.xlu0 %2137 }
 0x267   : > { %v2140_v42 = vunpack.i.h.bf16 %v2138_v18  ;;  %v2139_v2 = vunpack.i.l.bf16 %v2138_v18 }
 0x269   : > { %v1670_v63 = vsel %vm1669_vm15, %v1668_v7, %v2139_v2  ;;  %v1679_v8 = vsel %vm1669_vm15, %v1678_v36, %v2140_v42 }
 0x272   : > { %v2143_v28 = vpop.permute.xlu1 %2142 }
 0x273   : > { %v2145_v57 = vunpack.i.h.bf16 %v2143_v28  ;;  %v2144_v45 = vunpack.i.l.bf16 %v2143_v28 }
 0x275   : > { %v1680_v61 = vsel %vm1671_vm0, %v1679_v8, %v2145_v57  ;;  %v1672_v17 = vsel %vm1671_vm0, %v1670_v63, %v2144_v45 }
 0x276   : > { %v2148_v38 = vpop.permute.xlu0 %2147 }
 0x277   : > { %v2150_v10 = vunpack.i.h.bf16 %v2148_v38  ;;  %v2149_v37 = vunpack.i.l.bf16 %v2148_v38 }
 0x279   : > { %v1674_v14 = vsel %vm1673_vm1, %v1672_v17, %v2149_v37  ;;  %v1681_v23 = vsel %vm1673_vm1, %v1680_v61, %v2150_v10 }
 0x27a   : > { %v1821_v21 = vpack.c.bf16 %v1681_v23, %v1674_v14 }
 0x27c   : > { %1690 = vst [vmem:[%s177_s30] sm:$0xff] %v1821_v21 }
 0x27d   : > { %2177 = shalt.err (!%p2174_p5)
}
 0x27e   : > { %s2178_s18 = scalar_lea.hbm %s3453_s7, 128  ;;  %s2182_s23 = scalar_lea.hbm %s3505_s3, 256 }
 0x27f   : > { %p2179_p6 = scmp.ne.s32.totalorder %s3453_s7, %s2178_s18  ;;  %p2183_p10 = scmp.lt.u32.totalorder %s3453_s7, %s3505_s3 }
 0x280   : > { %p2184_p11 = scmp.lt.u32.totalorder %s2182_s23, %s2178_s18  ;;  %p2186_p13 = scmp.lt.u32.totalorder %s2178_s18, %s3453_s7 }
 0x281   : > { %p2180_p7 = pnand %p2179_p6, %p2317_p4 }
 0x282   : > { %p2185_p12 = por %p2184_p11, %p2183_p10 }
 0x283   : > { %p2181_p9 = pneg %p2180_p7 }
 0x284   : > { %p2187_p0 = por %p2186_p13, %p2185_p12 }
 0x286   : > { %p2188_p1 = pnand %p2187_p0, %p2181_p9 }
 0x288   : > { %2191 = shalt.err (!%p2188_p1)
}
 0x289   : > { %2048 = dma.vmem_to_hbm [thread:$0]  (%p2317_p4), %s3455_s4, 128, %s3453_s7, %s1692_s15  }
 0x28a PF: > { %p2054_p2 = scmp.ge.s32.totalorder %s2242_s17, 2  ;;  %s1720_s28 = sand.u32 1, %s2222_s12  }
 0x28b   : > { %s1721_s29 = scalar_lea.sflag [#allocation3], %s1720_s28 }
 0x28c   : > { %p2051_p3 = pnand %p2054_p2, %p2324_p8 }
 0x28e   : > { %2217 = dma.done.wait (!%p2051_p3), %s1721_s29, 128  }
 0x28f   : > { %2219 = vsyncadd (!%p2051_p3), %s1721_s29, 4294967168  ;;  %s16_s17 = sadd.s32 1, %s2242_s17   ;;  %s3544_s12 = smov %s2226_s13 }
 0x290   : > { %p13_p5 = scmp.ge.s32.totalorder %s16_s17, 4   ;;  %s3545_s13 = smov %s2230_s14 }
 0x291   : > { %s3546_s14 = smov %s2330_s25  ;;  %s3547_s15 = smov %s2238_s16 }
 0x292   : > { %s3548_s16 = smov %s3550_s20  ;;  %15 = sbr.rel (!%p13_p5) target bundleno = 4 (0x4), region = 68 }
 0x299   :  { %1726 = vsyncpa [#allocation3], 1 }
 0x29a   :  { %1728 = vsyncpa [#allocation3 + $0x1], 1 }

</bundles_post_ra>
